<compile_context>
chip_gen: v5e
topology: v5e:2x2
jax: 0.10.0
libtpu: 0.0.40
codegen_flags: <defaults>
</compile_context>

<pallas_src>
import numpy as np
import jax
import jax.numpy as jnp
from jax.experimental import pallas as pl
from jax.experimental.pallas import tpu as pltpu


def _attention_mil_kernel(x_ref, wm_ref, bm_ref, w1_ref, b1_ref, w2_ref, b2_ref,
                          o_ref):
    tb, n_inst, d_in = x_ref.shape
    d_out = wm_ref.shape[1]
    inner = w1_ref.shape[1]

    # ---- inner network (Linear) on all instances of this batch tile --------
    # (tb*n_inst, d_in) @ (d_in, d_out): full-height MXU pass (128 rows here).
    x2 = x_ref[...].reshape(tb * n_inst, d_in)
    h = jnp.dot(x2, wm_ref[...], preferred_element_type=jnp.float32) + bm_ref[...]

    # ---- embed(): L2 normalize along feature dim (rsqrt on the EUP + eps) ---
    inv_norm = jax.lax.rsqrt(jnp.sum(h * h, axis=-1, keepdims=True) + 1e-12)
    e = h * inv_norm

    # ---- gated attention scores: att2(tanh(att1(e))) ------------------------
    a1 = jnp.tanh(jnp.dot(e, w1_ref[...], preferred_element_type=jnp.float32)
                  + b1_ref[...])
    # att2 is (inner -> 1); compute as a lane reduction (keeps lanes dense,
    # avoids a 1-column MXU pass).
    a1_3 = a1.reshape(tb, n_inst, inner)
    scores = jnp.sum(a1_3 * w2_ref[...], axis=-1) + b2_ref[...]      # (tb, n_inst)

    # ---- softmax over instances (dim=1 of the original (B, N, D) input) -----
    scores = scores - jnp.max(scores, axis=-1, keepdims=True)
    p = jnp.exp(scores)
    att = p * pl.reciprocal(jnp.sum(p, axis=-1, keepdims=True), approx=True)

    # ---- attention-weighted pooling over instances ---------------------------
    e3 = e.reshape(tb, n_inst, d_out)
    o_ref[...] = jnp.sum(e3 * att[:, :, None], axis=1).astype(o_ref.dtype)


def attention_mil_forward(x, params, *, tile_b=8):
    """AttentionMIL.forward: x (B, N, d_in) -> pooled embedding (B, d_out)."""
    wm, bm = params["wm"], params["bm"]
    w1, b1 = params["w1"], params["b1"]
    w2, b2 = params["w2"], params["b2"]
    B, N, d_in = x.shape
    d_out = wm.shape[1]
    assert B % tile_b == 0, "batch must be a multiple of the batch tile"

    return pl.pallas_call(
        _attention_mil_kernel,
        out_shape=jax.ShapeDtypeStruct((B, d_out), jnp.float32),
        grid=(B // tile_b,),
        in_specs=[
            pl.BlockSpec((tile_b, N, d_in), lambda b: (b, 0, 0)),
            # parameters: constant index_maps -> fetched once, VMEM-resident.
            pl.BlockSpec(wm.shape, lambda b: (0, 0)),
            pl.BlockSpec(bm.shape, lambda b: (0, 0)),
            pl.BlockSpec(w1.shape, lambda b: (0, 0)),
            pl.BlockSpec(b1.shape, lambda b: (0, 0)),
            pl.BlockSpec(w2.shape, lambda b: (0, 0)),
            pl.BlockSpec(b2.shape, lambda b: (0, 0)),
        ],
        out_specs=pl.BlockSpec((tile_b, d_out), lambda b: (b, 0)),
        compiler_params=pltpu.CompilerParams(
            dimension_semantics=("parallel",)),
    )(x, wm, bm, w1, b1, w2, b2)


def attention_mil_reference(x, params):
    """Pure-JAX reference (mirrors the PyTorch forward)."""
    hi = jax.lax.Precision.HIGHEST
    h = jnp.einsum("bni,io->bno", x, params["wm"], precision=hi) + params["bm"]
    e = h / jnp.linalg.norm(h, axis=-1, keepdims=True)
    a = jnp.tanh(jnp.einsum("bno,oh->bnh", e, params["w1"], precision=hi)
                 + params["b1"])
    s = jnp.einsum("bnh,h->bn", a, params["w2"][0], precision=hi) + params["b2"][0, 0]
    att = jax.nn.softmax(s, axis=1)
    return jnp.sum(e * att[:, :, None], axis=1)


def init_params(key, d_in, d_out, inner_shape):
    """Deterministic params. Linear weights stored as (in, out); biases (1, out)."""
    k1, k2, k3 = jax.random.split(key, 3)
    scale = 0.1
    return {
        "wm": scale * jax.random.normal(k1, (d_in, d_out), jnp.float32),
        "bm": jnp.zeros((1, d_out), jnp.float32),
        "w1": scale * jax.random.normal(k2, (d_out, inner_shape), jnp.float32),
        "b1": 0.01 * jnp.ones((1, inner_shape), jnp.float32),
        "w2": scale * jax.random.normal(k3, (1, inner_shape), jnp.float32),
        "b2": jnp.zeros((1, 1), jnp.float32),
    }


if __name__ == "__main__":
    # Small but lane-/MXU-friendly shapes: 128-wide feature dims, batch tile 8,
    # 16 instances per bag (8 * 16 = 128 matmul rows per grid step).
    B, N = 16, 16
    D_IN, D_OUT, INNER = 128, 128, 128

    key = jax.random.PRNGKey(0)
    kp, kx = jax.random.split(key)
    params = init_params(kp, D_IN, D_OUT, INNER)
    x = jax.random.normal(kx, (B, N, D_IN), jnp.float32)

    out = attention_mil_forward(x, params)
    out = jax.block_until_ready(out)

    # correctness check against the pure-JAX reference
    ref = jax.block_until_ready(attention_mil_reference(x, params))
    assert out.shape == (B, D_OUT)
    np.testing.assert_allclose(np.asarray(out), np.asarray(ref),
                               atol=1e-2, rtol=1e-2)

    print("KERNEL_OK")
</pallas_src>

<mosaic_0001>
module attributes {stable_mosaic.version = 11 : i64} {
  func.func @_attention_mil_kernel(%arg0: i32, %arg1: memref<8x16x128xf32, #tpu.memory_space<vmem>>, %arg2: memref<128x128xf32, #tpu.memory_space<vmem>>, %arg3: memref<1x128xf32, #tpu.memory_space<vmem>>, %arg4: memref<128x128xf32, #tpu.memory_space<vmem>>, %arg5: memref<1x128xf32, #tpu.memory_space<vmem>>, %arg6: memref<1x128xf32, #tpu.memory_space<vmem>>, %arg7: memref<1x1xf32, #tpu.memory_space<vmem>>, %arg8: memref<8x128xf32, #tpu.memory_space<vmem>>) attributes {dimension_semantics = [#tpu.dimension_semantics<parallel>], iteration_bounds = array<i64: 2>, scalar_prefetch = 0 : i64, scratch_operands = 0 : i64, tpu.core_type = #tpu.core_type<tc>, window_params = [{transform_indices = @transform_0, window_bounds = array<i64: 8, 16, 128>}, {pipeline_mode = #tpu.pipeline_mode<synchronous>, transform_indices = @transform_1, window_bounds = array<i64: 128, 128>}, {pipeline_mode = #tpu.pipeline_mode<synchronous>, transform_indices = @transform_2, window_bounds = array<i64: 1, 128>}, {pipeline_mode = #tpu.pipeline_mode<synchronous>, transform_indices = @transform_3, window_bounds = array<i64: 128, 128>}, {pipeline_mode = #tpu.pipeline_mode<synchronous>, transform_indices = @transform_4, window_bounds = array<i64: 1, 128>}, {pipeline_mode = #tpu.pipeline_mode<synchronous>, transform_indices = @transform_5, window_bounds = array<i64: 1, 128>}, {pipeline_mode = #tpu.pipeline_mode<synchronous>, transform_indices = @transform_6, window_bounds = array<i64: 1, 1>}, {transform_indices = @transform_7, window_bounds = array<i64: 8, 128>}]} {
    %c0 = arith.constant 0 : index
    %c0_0 = arith.constant 0 : index
    %c0_1 = arith.constant 0 : index
    %0 = vector.load %arg1[%c0, %c0_0, %c0_1] : memref<8x16x128xf32, #tpu.memory_space<vmem>>, vector<8x16x128xf32>
    %1 = vector.shape_cast %0 : vector<8x16x128xf32> to vector<128x128xf32>
    %c0_2 = arith.constant 0 : index
    %c0_3 = arith.constant 0 : index
    %2 = vector.load %arg2[%c0_2, %c0_3] : memref<128x128xf32, #tpu.memory_space<vmem>>, vector<128x128xf32>
    %cst = arith.constant dense<0.000000e+00> : vector<128x128xf32>
    %3 = tpu.matmul %1, %2, %cst {dimension_numbers = #tpu.dot_dimension_numbers<[1], [0], [0], [1], [0, 0, 1, 1], [], []>} : vector<128x128xf32>, vector<128x128xf32>, vector<128x128xf32> -> vector<128x128xf32>
    %c0_4 = arith.constant 0 : index
    %c0_5 = arith.constant 0 : index
    %4 = vector.load %arg3[%c0_4, %c0_5] : memref<1x128xf32, #tpu.memory_space<vmem>>, vector<1x128xf32>
    %5 = vector.broadcast %4 : vector<1x128xf32> to vector<128x128xf32>
    %6 = arith.addf %3, %5 : vector<128x128xf32>
    %7 = arith.mulf %6, %6 : vector<128x128xf32>
    %cst_6 = arith.constant dense<0.000000e+00> : vector<128xf32>
    %8 = vector.multi_reduction <add>, %7, %cst_6 [1] : vector<128x128xf32> to vector<128xf32>
    %9 = vector.shape_cast %8 : vector<128xf32> to vector<128x1xf32>
    %cst_7 = arith.constant 9.99999996E-13 : f32
    %10 = vector.broadcast %cst_7 : f32 to vector<128x1xf32>
    %11 = arith.addf %9, %10 : vector<128x1xf32>
    %12 = math.rsqrt %11 : vector<128x1xf32>
    %13 = vector.broadcast %12 : vector<128x1xf32> to vector<128x128xf32>
    %14 = arith.mulf %6, %13 : vector<128x128xf32>
    %c0_8 = arith.constant 0 : index
    %c0_9 = arith.constant 0 : index
    %15 = vector.load %arg4[%c0_8, %c0_9] : memref<128x128xf32, #tpu.memory_space<vmem>>, vector<128x128xf32>
    %cst_10 = arith.constant dense<0.000000e+00> : vector<128x128xf32>
    %16 = tpu.matmul %14, %15, %cst_10 {dimension_numbers = #tpu.dot_dimension_numbers<[1], [0], [0], [1], [0, 0, 1, 1], [], []>} : vector<128x128xf32>, vector<128x128xf32>, vector<128x128xf32> -> vector<128x128xf32>
    %c0_11 = arith.constant 0 : index
    %c0_12 = arith.constant 0 : index
    %17 = vector.load %arg5[%c0_11, %c0_12] : memref<1x128xf32, #tpu.memory_space<vmem>>, vector<1x128xf32>
    %18 = vector.broadcast %17 : vector<1x128xf32> to vector<128x128xf32>
    %19 = arith.addf %16, %18 : vector<128x128xf32>
    %20 = math.tanh %19 : vector<128x128xf32>
    %21 = vector.shape_cast %20 : vector<128x128xf32> to vector<8x16x128xf32>
    %c0_13 = arith.constant 0 : index
    %c0_14 = arith.constant 0 : index
    %22 = vector.load %arg6[%c0_13, %c0_14] : memref<1x128xf32, #tpu.memory_space<vmem>>, vector<1x128xf32>
    %23 = vector.shape_cast %22 : vector<1x128xf32> to vector<1x1x128xf32>
    %24 = vector.broadcast %23 : vector<1x1x128xf32> to vector<8x16x128xf32>
    %25 = arith.mulf %21, %24 : vector<8x16x128xf32>
    %cst_15 = arith.constant dense<0.000000e+00> : vector<8x16xf32>
    %26 = vector.multi_reduction <add>, %25, %cst_15 [2] : vector<8x16x128xf32> to vector<8x16xf32>
    %c0_16 = arith.constant 0 : index
    %c0_17 = arith.constant 0 : index
    %27 = vector.load %arg7[%c0_16, %c0_17] : memref<1x1xf32, #tpu.memory_space<vmem>>, vector<1x1xf32>
    %28 = vector.broadcast %27 : vector<1x1xf32> to vector<8x16xf32>
    %29 = arith.addf %26, %28 : vector<8x16xf32>
    %cst_18 = arith.constant dense<0xFF800000> : vector<8xf32>
    %30 = vector.multi_reduction <maximumf>, %29, %cst_18 [1] : vector<8x16xf32> to vector<8xf32>
    %31 = vector.shape_cast %30 : vector<8xf32> to vector<8x1xf32>
    %32 = vector.broadcast %31 : vector<8x1xf32> to vector<8x16xf32>
    %33 = arith.subf %29, %32 : vector<8x16xf32>
    %34 = math.exp %33 : vector<8x16xf32>
    %cst_19 = arith.constant dense<0.000000e+00> : vector<8xf32>
    %35 = vector.multi_reduction <add>, %34, %cst_19 [1] : vector<8x16xf32> to vector<8xf32>
    %36 = vector.shape_cast %35 : vector<8xf32> to vector<8x1xf32>
    %37 = tpu.reciprocal %36 {approx = true} : vector<8x1xf32> -> vector<8x1xf32>
    %38 = vector.broadcast %37 : vector<8x1xf32> to vector<8x16xf32>
    %39 = arith.mulf %34, %38 : vector<8x16xf32>
    %40 = vector.shape_cast %14 : vector<128x128xf32> to vector<8x16x128xf32>
    %41 = vector.shape_cast %39 : vector<8x16xf32> to vector<8x16x1xf32>
    %42 = vector.broadcast %41 : vector<8x16x1xf32> to vector<8x16x128xf32>
    %43 = arith.mulf %40, %42 : vector<8x16x128xf32>
    %cst_20 = arith.constant dense<0.000000e+00> : vector<8x128xf32>
    %44 = vector.multi_reduction <add>, %43, %cst_20 [1] : vector<8x16x128xf32> to vector<8x128xf32>
    %c0_21 = arith.constant 0 : index
    %c0_22 = arith.constant 0 : index
    %45 = vector.load %arg8[%c0_21, %c0_22] : memref<8x128xf32, #tpu.memory_space<vmem>>, vector<8x128xf32>
    tpu.vector_store %arg8[%c0_21, %c0_22], %44 {strides = array<i32>} : memref<8x128xf32, #tpu.memory_space<vmem>>, vector<8x128xf32>,
    return
  }
  func.func @transform_0(%arg0: i32) -> (i32, i32, i32) {
    %c0_i32 = arith.constant 0 : i32
    %c0_i32_0 = arith.constant 0 : i32
    %c0_i32_1 = arith.constant 0 : i32
    return %arg0, %c0_i32, %c0_i32_0 : i32, i32, i32
  }
  func.func @transform_1(%arg0: i32) -> (i32, i32) {
    %c0_i32 = arith.constant 0 : i32
    %c0_i32_0 = arith.constant 0 : i32
    %c0_i32_1 = arith.constant 0 : i32
    return %c0_i32, %c0_i32_0 : i32, i32
  }
  func.func @transform_2(%arg0: i32) -> (i32, i32) {
    %c0_i32 = arith.constant 0 : i32
    %c0_i32_0 = arith.constant 0 : i32
    %c0_i32_1 = arith.constant 0 : i32
    return %c0_i32, %c0_i32_0 : i32, i32
  }
  func.func @transform_3(%arg0: i32) -> (i32, i32) {
    %c0_i32 = arith.constant 0 : i32
    %c0_i32_0 = arith.constant 0 : i32
    %c0_i32_1 = arith.constant 0 : i32
    return %c0_i32, %c0_i32_0 : i32, i32
  }
  func.func @transform_4(%arg0: i32) -> (i32, i32) {
    %c0_i32 = arith.constant 0 : i32
    %c0_i32_0 = arith.constant 0 : i32
    %c0_i32_1 = arith.constant 0 : i32
    return %c0_i32, %c0_i32_0 : i32, i32
  }
  func.func @transform_5(%arg0: i32) -> (i32, i32) {
    %c0_i32 = arith.constant 0 : i32
    %c0_i32_0 = arith.constant 0 : i32
    %c0_i32_1 = arith.constant 0 : i32
    return %c0_i32, %c0_i32_0 : i32, i32
  }
  func.func @transform_6(%arg0: i32) -> (i32, i32) {
    %c0_i32 = arith.constant 0 : i32
    %c0_i32_0 = arith.constant 0 : i32
    %c0_i32_1 = arith.constant 0 : i32
    return %c0_i32, %c0_i32_0 : i32, i32
  }
  func.func @transform_7(%arg0: i32) -> (i32, i32) {
    %c0_i32 = arith.constant 0 : i32
    %c0_i32_0 = arith.constant 0 : i32
    return %arg0, %c0_i32 : i32, i32
  }
}

</mosaic_0001>

<bundles_post_ra>
// kernel: tpu_custom_call.1
= control target key start
LH: loop header
LB: loop body
LE: loop exit
PB: predicated region body
PF: predicated region fallthrough
CT: control target
= control target key end

     0   :  { %s2506_s0 = inlined_call_operand.hbm [shape: f32[16,16,128], index: 0, kind: input, shape index: {}]   ;;  %s2507_s1 = inlined_call_operand.hbm [shape: f32[128,128], index: 1, kind: input, shape index: {}]   ;;  %s2508_s2 = inlined_call_operand.vmem [shape: f32[1,128], index: 2, kind: input, shape index: {}]   ;;  %s2509_s3 = inlined_call_operand.hbm [shape: f32[128,128], index: 3, kind: input, shape index: {}]   ;;  %s2510_s4 = inlined_call_operand.vmem [shape: f32[1,128], index: 4, kind: input, shape index: {}]   ;;  %s2511_s5 = inlined_call_operand.vmem [shape: f32[1,128], index: 5, kind: input, shape index: {}]   ;;  %s2512_s6 = inlined_call_operand.<no memory space> [shape: f32[1,1], index: 6, kind: input, shape index: {}]   ;;  %s2513_s7 = inlined_call_operand.hbm [shape: f32[16,128], index: 7, kind: output, shape index: {}]  }
   0x1   :  { %v12_v0 = vstv %s2512_s6 }
   0x2   :  { %13 = vst [vmem:[#allocation2] sm:$0x1] %v12_v0 }
   0x3   :  { %14 = vsyncpa [#allocation4], 0 }
   0x4   :  { %16 = vsyncpa [#allocation4 + $0x1], 0 }
   0x5   :  { %17 = vsyncpa [#allocation7], 0 }
   0x6   :  { %18 = vsyncpa [#allocation5], 0 }
   0x7   :  { %20 = vsyncpa [#allocation5 + $0x1], 0  ;;  %s1825_s26 = smov 0   ;;  %s1827_s27 = smov 0  }
   0x8   :  { %s1829_s28 = smov 0   ;;  %s1831_s29 = smov 0  }
   0x9 LB: > { %s1846_s6 = sadd.s32 4294967295, %s1775_s29   ;;  %s1388_s30 = sadd.s32 4294967294, %s1775_s29   ;;  %s1775_s29 = sphi %s1831_s29, %s2527_s29   ;;  %s1771_s28 = sphi %s1829_s28, %s2526_s28   ;;  %s1767_s27 = sphi %s1827_s27, %s2525_s27   ;;  %s1763_s26 = sphi %s1825_s26, %s2524_s26  }
   0xa   : > { %p46_p0 = scmp.ne.s32.totalorder %s1767_s27, %s1763_s26  ;;  %p47_p1 = scmp.eq.s32.totalorder %s1846_s6, 0 }
   0xb   : > { %p196_p2 = scmp.eq.s32.totalorder %s1846_s6, 1  ;;  %p202_p3 = scmp.eq.s32.totalorder %s1388_s30, 1 }
   0xc   : > { %p1855_p4 = por %p47_p1, %p46_p0  ;;  %p1389_p5 = scmp.ge.s32.totalorder %s1775_s29, 1 }
   0xd   : > { %p1860_p6 = por %p202_p3, %p46_p0  ;;  %p209_p7 = scmp.lt.s32.totalorder %s1775_s29, 3 }
   0xe   : > { %s220_s12 = sshll.u32 %s2507_s1, 4  ;;  %s1777_s14 = smov [#allocation6]   ;;  %s221_s12 = int_to_ptr.hbm [resolvable:$true] %s220_s12 }
   0xf   : > { %p1868_p8 = pnand %p1389_p5, %p209_p7  ;;  %s222_s15 = sshll.u32 %s1777_s14, 4  ;;  %s223_s15 = int_to_ptr.vmem [resolvable:$true] %s222_s15 }
  0x10   : > { %s237_s18 = sshll.u32 %s2509_s3, 4  ;;  %s2514_s19 = smov 128   ;;  %s238_s18 = int_to_ptr.hbm [resolvable:$true] %s237_s18 }
  0x11   : > { %p1452_p9 = pneg %p1868_p8  ;;  %s2515_s20 = smov 8  }
  0x12   : > { %s1780_s21 = smov [#allocation8]   ;;  %s1887_s23 = sadd.s32 1, %s1775_s29  }
  0x13   : > { %p1453_p10 = pnand %p1452_p9, %p47_p1  ;;  %s239_s22 = sshll.u32 %s1780_s21, 4  ;;  %s240_s22 = int_to_ptr.vmem [resolvable:$true] %s239_s22 }
  0x14   : > { %s33_s24 = sadd.s32 1, %s1771_s28  ;;  %s30_s25 = ssub.s32 %s1775_s29, %s1887_s23 }
  0x15   : > { %1455 = dma.hbm_to_vmem [thread:$0]  (!%p1453_p10), %s221_s12, 2048, %s223_s15, [#allocation7], %s2514_s19, %s2514_s19, %s2515_s20  }
  0x16   : > { %1458 = dma.hbm_to_vmem [thread:$0]  (!%p1453_p10), %s238_s18, 2048, %s240_s22, [#allocation7], %s2514_s19, %s2514_s19, %s2515_s20  }
  0x17   : > { %p40_p12 = scmp.ne.s32.totalorder %s1771_s28, %s1767_s27  ;;  %p31_p13 = scmp.eq.s32.totalorder %s30_s25, 0 }
  0x18   : > { %p41_p0 = scmp.eq.s32.totalorder %s1775_s29, 0  ;;  %p1469_p5 = scmp.lt.s32.totalorder %s1775_s29, 2 }
  0x19   : > { %p1897_p3 = por %p196_p2, %p40_p12  ;;  %s262_s11 = sand.u32 1, %s1771_s28  }
  0x1a   : > { %s1903_s10 = scalar_select %p31_p13, %s1771_s28, %s33_s24  }
  0x1b   : > { %p42_p7 = por %p41_p0, %p40_p12  ;;  %s1393_s12 = sshll.u32 %s262_s11, 7 }
  0x1c   : > { %s1407_s14 = sshll.u32 %s1775_s29, 7  ;;  %s266_s18 = scalar_lea.vmem [#allocation3], %s1393_s12 }
  0x1d   : > { %s272_s17 = scalar_lea.hbm %s2506_s0, %s1407_s14  ;;  %s275_s21 = sshll.u32 %s266_s18, 4  ;;  %s276_s21 = int_to_ptr.vmem [resolvable:$true] %s275_s21 }
  0x1e   : > { %s273_s22 = sshll.u32 %s272_s17, 4  ;;  %p1910_p2 = pnand %p1469_p5, %p42_p7  ;;  %s274_s22 = int_to_ptr.hbm [resolvable:$true] %s273_s22 }
  0x1f   : > { %s263_s24 = scalar_lea.sflag [#allocation4], %s262_s11  ;;  %s1675_s19 = sshra.s32 %s274_s22, 4  ;;  %s1676_s19 = int_to_ptr.hbm [resolvable:$true] %s1675_s19 }
  0x20   : > { %s1677_s20 = scalar_lea.hbm %s1676_s19, 128  ;;  %p1679_p10 = pneg %p1910_p2 }
  0x21   : > { %p1678_p9 = scmp.ne.s32.totalorder %s1676_s19, %s1677_s20  ;;  %s1682_s15 = scalar_lea.hbm %s2506_s0, 256 }
  0x22   : > { %p1683_p0 = scmp.lt.s32.totalorder %s1676_s19, %s2506_s0  ;;  %p1684_p5 = scmp.lt.s32.totalorder %s1682_s15, %s1677_s20 }
  0x23   : > { %p1680_p12 = pnand %p1679_p10, %p1678_p9 }
  0x24   : > { %p1685_p7 = por %p1684_p5, %p1683_p0 }
  0x25   : > { %p1681_p13 = pneg %p1680_p12 }
  0x27   : > { %p1686_p11 = pnand %p1685_p7, %p1681_p13 }
  0x29   : > { %1689 = shalt.err (!%p1686_p11)
}
  0x2a   : > { %s2521_s11 = smov 8   ;;  %s2522_s18 = smov 128  }
  0x2b   : > { %1462 = dma.hbm_to_vmem [thread:$0]  (!%p1910_p2), %s274_s22, 2048, %s276_s21, %s263_s24, %s2522_s18, %s2522_s18, %s2521_s11  }
  0x2c   : > { %287 = sbr.rel (%p1868_p8) target bundleno = 1310 (0x51e), region = 48  ;;  %s1930_s14 = sand.u32 (!%p1868_p8), 1, %s1767_s27  }
  0x2d   : > { %s1398_s19 = sshll.u32 (!%p1868_p8), %s1930_s14, 7  ;;  %s290_s20 = scalar_lea.sflag (!%p1868_p8), [#allocation4], %s1930_s14 }
  0x2e   : > { %s1934_s12 = scalar_lea.vmem (!%p1868_p8), [#allocation3], %s1398_s19 }
  0x31   : > { %1750 = dma.done.wait (%p1855_p4), %s290_s20, 2048  }
  0x32   : > { %1752 = vsyncadd (%p1855_p4), %s290_s20, 4294965248 }
  0x33   : > { %1754 = dma.done.wait (%p47_p1), [#allocation7], 4096  }
  0x34   : > { %1756 = vsyncadd (%p47_p1), [#allocation7], 4294963200  ;;  %v367_v1 = vld [vmem:[#allocation6 + $0x78] sm:$0xff]  ;;  %v366_v2 = vld [vmem:[#allocation6 + $0x70] sm:$0xff]  ;;  %s1401_s15 = sshll.u32 %s1930_s14, 3  ;;  %s1403_s16 = sshll.u32 %s1846_s6, 3 }
  0x35   : > { %1408 = vmatpush.msra.mxu2 %v367_v1  ;;  %372 = vmatpush.msra.mxu0 %v367_v1  ;;  %v365_v3 = vld [vmem:[#allocation6 + $0x68] sm:$0xff]  ;;  %v364_v4 = vld [vmem:[#allocation6 + $0x60] sm:$0xff]  ;;  %v363_v5 = vld [vmem:[#allocation6 + $0x58] sm:$0xff]  ;;  %s1294_s18 = scalar_lea.hbm %s2513_s7, %s1403_s16  ;;  %s334_s6 = scalar_lea.vmem [#allocation9], %s1401_s15 }
  0x36   : > { %v362_v6 = vld [vmem:[#allocation6 + $0x50] sm:$0xff]  ;;  %v361_v7 = vld [vmem:[#allocation6 + $0x48] sm:$0xff]  ;;  %v360_v8 = vld [vmem:[#allocation6 + $0x40] sm:$0xff]  ;;  %s1296_s19 = sshll.u32 %s334_s6, 4  ;;  %s1298_s20 = sshll.u32 %s1294_s18, 4  ;;  %s1297_s19 = int_to_ptr.vmem [resolvable:$true] %s1296_s19  ;;  %s1299_s20 = int_to_ptr.hbm [resolvable:$true] %s1298_s20 }
  0x37   : > { %1409 = vmatpush.msra.mxu2 %v366_v2  ;;  %373 = vmatpush.msra.mxu0 %v366_v2  ;;  %v359_v9 = vld [vmem:[#allocation6 + $0x38] sm:$0xff]  ;;  %v358_v10 = vld [vmem:[#allocation6 + $0x30] sm:$0xff]  ;;  %v357_v11 = vld [vmem:[#allocation6 + $0x28] sm:$0xff]  ;;  %s1719_s8 = sshra.s32 %s1299_s20, 4  ;;  %s1725_s25 = scalar_lea.hbm %s2513_s7, 16  ;;  %s1720_s8 = int_to_ptr.hbm [resolvable:$true] %s1719_s8 }
  0x38   : > { %v356_v12 = vld [vmem:[#allocation6 + $0x20] sm:$0xff]  ;;  %v355_v13 = vld [vmem:[#allocation6 + $0x18] sm:$0xff]  ;;  %v354_v14 = vld [vmem:[#allocation6 + $0x10] sm:$0xff]  ;;  %s1721_s13 = scalar_lea.hbm %s1720_s8, 8  ;;  %p1726_p11 = scmp.lt.s32.totalorder %s1720_s8, %s2513_s7 }
  0x39   : > { %1410 = vmatpush.msra.mxu2 %v365_v3  ;;  %374 = vmatpush.msra.mxu0 %v365_v3  ;;  %v353_v15 = vld [vmem:[#allocation6 + $0x8] sm:$0xff]  ;;  %v352_v16 = vld [vmem:[#allocation6] sm:$0xff]  ;;  %v346_v21 = vld [vmem:[%s1934_s12 + $0x50] sm:$0xff]  ;;  %p1722_p1 = scmp.ne.s32.totalorder %s1720_s8, %s1721_s13  ;;  %p1727_p2 = scmp.lt.s32.totalorder %s1725_s25, %s1721_s13 }
  0x3a   : > { %v344_v17 = vld [vmem:[%s1934_s12 + $0x40] sm:$0xff]  ;;  %v345_v19 = vld [vmem:[%s1934_s12 + $0x48] sm:$0xff]  ;;  %v338_v22 = vld [vmem:[%s1934_s12 + $0x10] sm:$0xff] }
  0x3b   : > { %1411 = vmatpush.msra.mxu2 %v364_v4  ;;  %375 = vmatpush.msra.mxu0 %v364_v4  ;;  %v336_v18 = vld [vmem:[%s1934_s12] sm:$0xff]  ;;  %v337_v20 = vld [vmem:[%s1934_s12 + $0x8] sm:$0xff]  ;;  %v347_v23 = vld [vmem:[%s1934_s12 + $0x58] sm:$0xff]  ;;  %p1723_p4 = pnand %p1722_p1, %p1897_p3  ;;  %p1728_p9 = por %p1727_p2, %p1726_p11 }
  0x3c   : > { %v339_v24 = vld [vmem:[%s1934_s12 + $0x18] sm:$0xff]  ;;  %v348_v25 = vld [vmem:[%s1934_s12 + $0x60] sm:$0xff]  ;;  %v349_v27 = vld [vmem:[%s1934_s12 + $0x68] sm:$0xff] }
  0x3d   : > { %1412 = vmatpush.msra.mxu2 %v363_v5  ;;  %376 = vmatpush.msra.mxu0 %v363_v5  ;;  %v340_v26 = vld [vmem:[%s1934_s12 + $0x20] sm:$0xff]  ;;  %v341_v28 = vld [vmem:[%s1934_s12 + $0x28] sm:$0xff]  ;;  %v350_v29 = vld [vmem:[%s1934_s12 + $0x70] sm:$0xff]  ;;  %p1724_p8 = pneg %p1723_p4 }
  0x3e   : > { %v342_v30 = vld [vmem:[%s1934_s12 + $0x30] sm:$0xff]  ;;  %v351_v31 = vld [vmem:[%s1934_s12 + $0x78] sm:$0xff]  ;;  %v690_v62 = vld [vmem:[#allocation8 + $0x68] sm:$0xff] }
  0x3f   : > { %1413 = vmatpush.msra.mxu2 %v362_v6  ;;  %377 = vmatpush.msra.mxu0 %v362_v6  ;;  %v343_v32 = vld [vmem:[%s1934_s12 + $0x38] sm:$0xff]  ;;  %v691_v60 = vld [vmem:[#allocation8 + $0x70] sm:$0xff]  ;;  %v689_v1 = vld [vmem:[#allocation8 + $0x60] sm:$0xff]  ;;  %s1284_s12 = scalar_lea.sflag [#allocation5], %s1930_s14  ;;  %p1729_p10 = pnand %p1728_p9, %p1724_p8 }
  0x40   : > { %v1963_v34 = vld [vmem:[%s2508_s2] ss:$0 sm:$0xff] }
  0x41   : > { %1414 = vmatpush.msra.mxu2 %v361_v7  ;;  %378 = vmatpush.msra.mxu0 %v361_v7  ;;  %v692_v59 = vld [vmem:[#allocation8 + $0x78] sm:$0xff] }
  0x42   : > { %1424 = vmatpush.msra.mxu3 %v692_v59  ;;  %697 = vmatpush.msra.mxu1 %v692_v59  ;;  %v688_v5 = vld [vmem:[#allocation8 + $0x58] sm:$0xff] }
  0x43   : > { %1415 = vmatpush.msra.mxu2 %v360_v8  ;;  %379 = vmatpush.msra.mxu0 %v360_v8 }
  0x44   : > { %1425 = vmatpush.msra.mxu3 %v691_v60  ;;  %698 = vmatpush.msra.mxu1 %v691_v60 }
  0x45   : > { %1416 = vmatpush.msra.mxu2 %v359_v9  ;;  %380 = vmatpush.msra.mxu0 %v359_v9 }
  0x46   : > { %1426 = vmatpush.msra.mxu3 %v690_v62  ;;  %699 = vmatpush.msra.mxu1 %v690_v62 }
  0x47   : > { %1417 = vmatpush.msra.mxu2 %v358_v10  ;;  %381 = vmatpush.msra.mxu0 %v358_v10 }
  0x48   : > { %1427 = vmatpush.msra.mxu3 %v689_v1  ;;  %700 = vmatpush.msra.mxu1 %v689_v1 }
  0x49   : > { %1418 = vmatpush.msra.mxu2 %v357_v11  ;;  %382 = vmatpush.msra.mxu0 %v357_v11 }
  0x4a   : > { %1428 = vmatpush.msra.mxu3 %v688_v5  ;;  %701 = vmatpush.msra.mxu1 %v688_v5 }
  0x4b   : > { %1419 = vmatpush.msra.mxu2 %v356_v12  ;;  %383 = vmatpush.msra.mxu0 %v356_v12 }
  0x4d   : > { %1420 = vmatpush.msra.mxu2 %v355_v13  ;;  %384 = vmatpush.msra.mxu0 %v355_v13 }
  0x4f   : > { %1421 = vmatpush.msra.mxu2 %v354_v14  ;;  %385 = vmatpush.msra.mxu0 %v354_v14 }
  0x51   : > { %1422 = vmatpush.msra.mxu2 %v353_v15  ;;  %386 = vmatpush.msra.mxu0 %v353_v15 }
  0x53   : > { %1423 = vmatpush.msra.mxu2 %v352_v16  ;;  %387 = vmatpush.msra.mxu0 %v352_v16 }
  0x54   : > { %412 = vmatmul.f32.vlgmr.msra.gmra.mxu2 %v344_v17  ;;  %388 = vmatmul.f32.vlgmr.msra.gmra.mxu0 %v336_v18 }
  0x5c   : > { %415 = vmatmul.f32.gmra.mxu2 %v345_v19  ;;  %391 = vmatmul.f32.gmra.mxu0 %v337_v20 }
  0x64   : > { %418 = vmatmul.f32.gmra.mxu2 %v346_v21  ;;  %394 = vmatmul.f32.gmra.mxu0 %v338_v22 }
  0x6c   : > { %421 = vmatmul.f32.gmra.mxu2 %v347_v23  ;;  %397 = vmatmul.f32.gmra.mxu0 %v339_v24  ;;  %v687_v23 = vld [vmem:[#allocation8 + $0x50] sm:$0xff]  ;;  %v686_v24 = vld [vmem:[#allocation8 + $0x48] sm:$0xff] }
  0x6d   : > { %1429 = vmatpush.msra.mxu3 %v687_v23  ;;  %702 = vmatpush.msra.mxu1 %v687_v23 }
  0x6f   : > { %1430 = vmatpush.msra.mxu3 %v686_v24  ;;  %703 = vmatpush.msra.mxu1 %v686_v24 }
  0x74   : > { %424 = vmatmul.f32.gmra.mxu2 %v348_v25  ;;  %400 = vmatmul.f32.gmra.mxu0 %v340_v26  ;;  %v685_v25 = vld [vmem:[#allocation8 + $0x40] sm:$0xff]  ;;  %v684_v26 = vld [vmem:[#allocation8 + $0x38] sm:$0xff] }
  0x75   : > { %1431 = vmatpush.msra.mxu3 %v685_v25  ;;  %704 = vmatpush.msra.mxu1 %v685_v25 }
  0x77   : > { %1432 = vmatpush.msra.mxu3 %v684_v26  ;;  %705 = vmatpush.msra.mxu1 %v684_v26 }
  0x7c   : > { %427 = vmatmul.f32.gmra.mxu2 %v349_v27  ;;  %403 = vmatmul.f32.gmra.mxu0 %v341_v28  ;;  %v683_v27 = vld [vmem:[#allocation8 + $0x30] sm:$0xff]  ;;  %v682_v28 = vld [vmem:[#allocation8 + $0x28] sm:$0xff] }
  0x7d   : > { %1433 = vmatpush.msra.mxu3 %v683_v27  ;;  %706 = vmatpush.msra.mxu1 %v683_v27 }
  0x7f   : > { %1434 = vmatpush.msra.mxu3 %v682_v28  ;;  %707 = vmatpush.msra.mxu1 %v682_v28 }
  0x84   : > { %430 = vmatmul.f32.gmra.mxu2 %v350_v29  ;;  %406 = vmatmul.f32.gmra.mxu0 %v342_v30  ;;  %v681_v29 = vld [vmem:[#allocation8 + $0x20] sm:$0xff]  ;;  %v680_v30 = vld [vmem:[#allocation8 + $0x18] sm:$0xff] }
  0x85   : > { %1435 = vmatpush.msra.mxu3 %v681_v29  ;;  %708 = vmatpush.msra.mxu1 %v681_v29 }
  0x87   : > { %1436 = vmatpush.msra.mxu3 %v680_v30  ;;  %709 = vmatpush.msra.mxu1 %v680_v30 }
  0x8c   : > { %433 = vmatmul.f32.gmra.mxu2 %v351_v31  ;;  %409 = vmatmul.f32.gmra.mxu0 %v343_v32  ;;  %v679_v31 = vld [vmem:[#allocation8 + $0x10] sm:$0xff]  ;;  %v678_v32 = vld [vmem:[#allocation8 + $0x8] sm:$0xff] }
  0x8d   : > { %1437 = vmatpush.msra.mxu3 %v679_v31  ;;  %710 = vmatpush.msra.mxu1 %v679_v31 }
  0x8f   : > { %1438 = vmatpush.msra.mxu3 %v678_v32  ;;  %711 = vmatpush.msra.mxu1 %v678_v32 }
  0xd1   : > { %v389_v33 = vpop.f32.mrf.mxu0 }
  0xd2   : > { %v1971_v39 = vadd.f32 %v1963_v34, %v389_v33  ;;  %v677_v33 = vld [vmem:[#allocation8] sm:$0xff] }
  0xd3   : > { %1439 = vmatpush.msra.mxu3 %v677_v33  ;;  %712 = vmatpush.msra.mxu1 %v677_v33 }
  0xd4   : > { %v437_v42 = vmul.f32 %v1971_v39, %v1971_v39 }
  0xd7   : > { %v413_v35 = vpop.f32.mrf.mxu2 }
  0xd8   : > { %v1966_v36 = vadd.f32 %v1963_v34, %v413_v35 }
  0xd9   : > { %v392_v37 = vpop.f32.mrf.mxu0 }
  0xda   : > { %v445_v38 = vmul.f32 %v1966_v36, %v1966_v36  ;;  %v1981_v45 = vadd.f32 %v1963_v34, %v392_v37 }
  0xdc   : > { %469 = vadd.xlane.f32.xlu0 %v445_v38  ;;  %v438_v48 = vmul.f32 %v1981_v45, %v1981_v45 }
  0xdf   : > { %v416_v40 = vpop.f32.mrf.mxu2 }
  0xe0   : > { %v1974_v41 = vadd.f32 %v1963_v34, %v416_v40 }
  0xe1   : > { %v395_v43 = vpop.f32.mrf.mxu0 }
  0xe2   : > { %v446_v44 = vmul.f32 %v1974_v41, %v1974_v41  ;;  %v1991_v51 = vadd.f32 %v1963_v34, %v395_v43 }
  0xe4   : > { %471 = vadd.xlane.f32.xlu1 %v446_v44  ;;  %453 = vadd.xlane.f32.xlu0 %v437_v42  ;;  %v439_v55 = vmul.f32 %v1991_v51, %v1991_v51 }
  0xe7   : > { %v419_v46 = vpop.f32.mrf.mxu2 }
  0xe8   : > { %v1984_v47 = vadd.f32 %v1963_v34, %v419_v46 }
  0xe9   : > { %v398_v49 = vpop.f32.mrf.mxu0 }
  0xea   : > { %v447_v50 = vmul.f32 %v1984_v47, %v1984_v47  ;;  %v1994_v52 = vadd.f32 %v1963_v34, %v398_v49 }
  0xec   : > { %473 = vadd.xlane.f32.xlu2 %v447_v50  ;;  %455 = vadd.xlane.f32.xlu1 %v438_v48  ;;  %v440_v56 = vmul.f32 %v1994_v52, %v1994_v52 }
  0xef   : > { %v422_v53 = vpop.f32.mrf.mxu2 }
  0xf0   : > { %v1997_v54 = vadd.f32 %v1963_v34, %v422_v53 }
  0xf1   : > { %v401_v57 = vpop.f32.mrf.mxu0 }
  0xf2   : > { %v448_v58 = vmul.f32 %v1997_v54, %v1997_v54  ;;  %v2006_v61 = vadd.f32 %v1963_v34, %v401_v57 }
  0xf4   : > { %457 = vadd.xlane.f32.xlu2 %v439_v55  ;;  %459 = vadd.xlane.f32.xlu1 %v440_v56  ;;  %v441_v2 = vmul.f32 %v2006_v61, %v2006_v61 }
  0xf5   : > { %475 = vadd.xlane.f32.xlu0 %v448_v58 }
  0xf7   : > { %v425_v63 = vpop.f32.mrf.mxu2 }
  0xf8   : > { %v2009_v0 = vadd.f32 %v1963_v34, %v425_v63 }
  0xf9   : > { %v404_v3 = vpop.f32.mrf.mxu0 }
  0xfa   : > { %v449_v4 = vmul.f32 %v2009_v0, %v2009_v0  ;;  %v2016_v6 = vadd.f32 %v1963_v34, %v404_v3 }
  0xfc   : > { %477 = vadd.xlane.f32.xlu2 %v449_v4  ;;  %v442_v9 = vmul.f32 %v2016_v6, %v2016_v6 }
  0xfd   : > { %461 = vadd.xlane.f32.xlu0 %v441_v2 }
  0xff   : > { %v428_v7 = vpop.f32.mrf.mxu2 }
 0x100   : > { %v2019_v8 = vadd.f32 %v1963_v34, %v428_v7 }
 0x101   : > { %v407_v10 = vpop.f32.mrf.mxu0 }
 0x102   : > { %v450_v11 = vmul.f32 %v2019_v8, %v2019_v8  ;;  %v2026_v12 = vadd.f32 %v1963_v34, %v407_v10 }
 0x104   : > { %463 = vadd.xlane.f32.xlu2 %v442_v9  ;;  %479 = vadd.xlane.f32.xlu1 %v450_v11  ;;  %v443_v15 = vmul.f32 %v2026_v12, %v2026_v12 }
 0x107   : > { %v431_v13 = vpop.f32.mrf.mxu2 }
 0x108   : > { %v2029_v14 = vadd.f32 %v1963_v34, %v431_v13 }
 0x109   : > { %v410_v16 = vpop.f32.mrf.mxu0 }
 0x10a   : > { %v451_v17 = vmul.f32 %v2029_v14, %v2029_v14  ;;  %v2036_v18 = vadd.f32 %v1963_v34, %v410_v16 }
 0x10c   : > { %465 = vadd.xlane.f32.xlu1 %v443_v15  ;;  %481 = vadd.xlane.f32.xlu0 %v451_v17  ;;  %v444_v21 = vmul.f32 %v2036_v18, %v2036_v18 }
 0x10f   : > { %v434_v19 = vpop.f32.mrf.mxu2 }
 0x110   : > { %v2039_v20 = vadd.f32 %v1963_v34, %v434_v19 }
 0x112   : > { %v452_v22 = vmul.f32 %v2039_v20, %v2039_v20 }
 0x114   : > { %483 = vadd.xlane.f32.xlu2 %v452_v22  ;;  %467 = vadd.xlane.f32.xlu0 %v444_v21 }
 0x14f   : > { %v470_v34 = vpop.xlane.xlu0 %469 }
 0x150   : > { %v493_v35 = vadd.f32 1e-12, %v470_v34 }
 0x152   : > { %1517 = vrsqrt.f32 %v493_v35  ;;  %vm587_vm1 = vweird.f32 %v493_v35 }
 0x157   : > { %v472_v37 = vpop.xlane.xlu1 %471  ;;  %v454_v38 = vpop.xlane.xlu0 %453 }
 0x158   : > { %v1518_v40 = vpop.eup %1517  ;;  %v494_v42 = vadd.f32 1e-12, %v472_v37  ;;  %v485_v43 = vadd.f32 1e-12, %v454_v38 }
 0x159   : > { %v582_v44 = vmul.f32 %v1518_v40, %v493_v35  ;;  %vm588_vm0 = vweird.f32 %v1518_v40 }
 0x15a   : > { %1519 = vrsqrt.f32 %v494_v42  ;;  %vm589_vm2 = vmor %vm587_vm1, %vm588_vm0  ;;  %vm597_vm5 = vweird.f32 %v494_v42  ;;  %vm507_vm6 = vweird.f32 %v485_v43 }
 0x15b   : > { %v583_v46 = vmul.f32 %v1518_v40, %v582_v44  ;;  %1521 = vrsqrt.f32 %v485_v43 }
 0x15d   : > { %v584_v48 = vmul.f32 0.5, %v583_v46 }
 0x15f   : > { %v585_v49 = vsub.f32 1.5, %v584_v48  ;;  %v474_v50 = vpop.xlane.xlu2 %473  ;;  %v456_v53 = vpop.xlane.xlu1 %455 }
 0x160   : > { %v1520_v55 = vpop.eup %1519  ;;  %v2045_v56 = vadd.f32 1e-12, %v474_v50  ;;  %v2047_v57 = vadd.f32 1e-12, %v456_v53 }
 0x161   : > { %v1522_v58 = vpop.eup %1521  ;;  %v592_v59 = vmul.f32 %v1520_v55, %v494_v42  ;;  %v586_v60 = vmul.f32 %v1518_v40, %v585_v49  ;;  %vm598_vm3 = vweird.f32 %v1520_v55 }
 0x162   : > { %v502_v62 = vmul.f32 %v1522_v58, %v485_v43  ;;  %1523 = vrsqrt.f32 %v2045_v56  ;;  %vm508_vm4 = vweird.f32 %v1522_v58  ;;  %vm599_vm7 = vmor %vm597_vm5, %vm598_vm3  ;;  %vm607_vm11 = vweird.f32 %v2045_v56 }
 0x163   : > { %v593_v63 = vmul.f32 %v1520_v55, %v592_v59  ;;  %1525 = vrsqrt.f32 %v2047_v57  ;;  %v590_v1 = vsel %vm589_vm2, %v1518_v40, %v586_v60  ;;  %vm509_vm8 = vmor %vm507_vm6, %vm508_vm4  ;;  %vm517_vm12 = vweird.f32 %v2047_v57 }
 0x164   : > { %v503_v2 = vmul.f32 %v1522_v58, %v502_v62  ;;  %v2052_v3 = vmul.f32 %v590_v1, %v1966_v36 }
 0x165   : > { %v594_v4 = vmul.f32 0.5, %v593_v63 }
 0x166   : > { %v504_v5 = vmul.f32 0.5, %v503_v2  ;;  %737 = vmatmul.f32.vlgmr.msra.gmra.mxu3 %v2052_v3 }
 0x167   : > { %v595_v7 = vsub.f32 1.5, %v594_v4  ;;  %v458_v9 = vpop.xlane.xlu2 %457  ;;  %v460_v10 = vpop.xlane.xlu1 %459 }
 0x168   : > { %v1524_v11 = vpop.eup %1523  ;;  %v505_v13 = vsub.f32 1.5, %v504_v5  ;;  %v2055_v15 = vadd.f32 1e-12, %v458_v9  ;;  %v2057_v16 = vadd.f32 1e-12, %v460_v10  ;;  %v476_v17 = vpop.xlane.xlu0 %475 }
 0x169   : > { %v1526_v19 = vpop.eup %1525  ;;  %v602_v21 = vmul.f32 %v1524_v11, %v2045_v56  ;;  %v2060_v36 = vadd.f32 1e-12, %v476_v17  ;;  %v596_v22 = vmul.f32 %v1520_v55, %v595_v7  ;;  %vm608_vm9 = vweird.f32 %v1524_v11 }
 0x16a   : > { %v512_v23 = vmul.f32 %v1526_v19, %v2047_v57  ;;  %1527 = vrsqrt.f32 %v2055_v15  ;;  %v506_v25 = vmul.f32 %v1522_v58, %v505_v13  ;;  %vm518_vm10 = vweird.f32 %v1526_v19  ;;  %vm609_vm13 = vmor %vm607_vm11, %vm608_vm9 }
 0x16b   : > { %v603_v24 = vmul.f32 %v1524_v11, %v602_v21  ;;  %1529 = vrsqrt.f32 %v2057_v16  ;;  %v600_v27 = vsel %vm599_vm7, %v1520_v55, %v596_v22  ;;  %vm519_vm14 = vmor %vm517_vm12, %vm518_vm10  ;;  %vm527_vm0 = vweird.f32 %v2055_v15 }
 0x16c   : > { %v513_v26 = vmul.f32 %v1526_v19, %v512_v23  ;;  %1531 = vrsqrt.f32 %v2060_v36  ;;  %v510_v29 = vsel %vm509_vm8, %v1522_v58, %v506_v25  ;;  %v2067_v30 = vmul.f32 %v600_v27, %v1974_v41 }
 0x16d   : > { %v604_v28 = vmul.f32 0.5, %v603_v24  ;;  %v2070_v32 = vmul.f32 %v510_v29, %v1971_v39  ;;  %vm617_vm1 = vweird.f32 %v2060_v36  ;;  %vm537_vm5 = vweird.f32 %v2057_v16 }
 0x16e   : > { %v514_v31 = vmul.f32 0.5, %v513_v26  ;;  %740 = vmatmul.f32.gmra.mxu3 %v2067_v30 }
 0x16f   : > { %v605_v33 = vsub.f32 1.5, %v604_v28  ;;  %v478_v34 = vpop.xlane.xlu2 %477  ;;  %713 = vmatmul.f32.vlgmr.msra.gmra.mxu1 %v2070_v32 }
 0x170   : > { %v1528_v35 = vpop.eup %1527  ;;  %v515_v37 = vsub.f32 1.5, %v514_v31  ;;  %v2074_v38 = vadd.f32 1e-12, %v478_v34  ;;  %v462_v40 = vpop.xlane.xlu0 %461 }
 0x171   : > { %v2076_v42 = vpop.eup %1529  ;;  %v522_v39 = vmul.f32 %v1528_v35, %v2055_v15  ;;  %v2080_v41 = vadd.f32 1e-12, %v462_v40  ;;  %v606_v43 = vmul.f32 %v1524_v11, %v605_v33  ;;  %vm528_vm15 = vweird.f32 %v1528_v35 }
 0x172   : > { %v1532_v44 = vpop.eup %1531  ;;  %v532_v46 = vmul.f32 %v2076_v42, %v2057_v16  ;;  %1533 = vrsqrt.f32 %v2074_v38  ;;  %v516_v48 = vmul.f32 %v1526_v19, %v515_v37  ;;  %vm529_vm3 = vmor %vm527_vm0, %vm528_vm15  ;;  %vm538_vm6 = vweird.f32 %v2076_v42 }
 0x173   : > { %v523_v49 = vmul.f32 %v1528_v35, %v522_v39  ;;  %v612_v50 = vmul.f32 %v1532_v44, %v2060_v36  ;;  %1535 = vrsqrt.f32 %v2080_v41  ;;  %v610_v56 = vsel %vm609_vm13, %v1524_v11, %v606_v43  ;;  %vm539_vm9 = vmor %vm537_vm5, %vm538_vm6 }
 0x174   : > { %v533_v53 = vmul.f32 %v2076_v42, %v532_v46  ;;  %v520_v55 = vsel %vm519_vm14, %v1526_v19, %v516_v48  ;;  %v2095_v60 = vmul.f32 %v610_v56, %v1984_v47  ;;  %vm618_vm2 = vweird.f32 %v1532_v44 }
 0x175   : > { %v524_v57 = vmul.f32 0.5, %v523_v49  ;;  %v613_v58 = vmul.f32 %v1532_v44, %v612_v50  ;;  %v2092_v59 = vmul.f32 %v520_v55, %v1981_v45  ;;  %vm619_vm4 = vmor %vm617_vm1, %vm618_vm2  ;;  %vm627_vm7 = vweird.f32 %v2074_v38 }
 0x176   : > { %v534_v62 = vmul.f32 0.5, %v533_v53  ;;  %743 = vmatmul.f32.gmra.mxu3 %v2095_v60  ;;  %vm547_vm11 = vweird.f32 %v2080_v41 }
 0x177   : > { %v525_v63 = vsub.f32 1.5, %v524_v57  ;;  %v614_v1 = vmul.f32 0.5, %v613_v58  ;;  %v464_v2 = vpop.xlane.xlu2 %463  ;;  %v480_v4 = vpop.xlane.xlu1 %479  ;;  %716 = vmatmul.f32.gmra.mxu1 %v2092_v59 }
 0x178   : > { %v1534_v5 = vpop.eup %1533  ;;  %v2101_v45 = vadd.f32 1e-12, %v464_v2  ;;  %v2103_v7 = vadd.f32 1e-12, %v480_v4  ;;  %v535_v13 = vsub.f32 1.5, %v534_v62 }
 0x179   : > { %v2105_v47 = vpop.eup %1535  ;;  %v615_v9 = vsub.f32 1.5, %v614_v1  ;;  %v622_v10 = vmul.f32 %v1534_v5, %v2074_v38  ;;  %v526_v11 = vmul.f32 %v1528_v35, %v525_v63  ;;  %vm628_vm8 = vweird.f32 %v1534_v5 }
 0x17a   : > { %v542_v17 = vmul.f32 %v2105_v47, %v2080_v41  ;;  %1537 = vrsqrt.f32 %v2101_v45  ;;  %vm629_vm10 = vmor %vm627_vm7, %vm628_vm8  ;;  %vm548_vm12 = vweird.f32 %v2105_v47  ;;  %vm637_vm13 = vweird.f32 %v2103_v7 }
 0x17b   : > { %v623_v15 = vmul.f32 %v1534_v5, %v622_v10  ;;  %1539 = vrsqrt.f32 %v2103_v7  ;;  %v530_v19 = vsel %vm529_vm3, %v1528_v35, %v526_v11  ;;  %v616_v21 = vmul.f32 %v1532_v44, %v615_v9  ;;  %vm549_vm14 = vmor %vm547_vm11, %vm548_vm12 }
 0x17c   : > { %v543_v22 = vmul.f32 %v2105_v47, %v542_v17  ;;  %v2115_v23 = vmul.f32 %v530_v19, %v1991_v51  ;;  %v536_v51 = vmul.f32 %v2076_v42, %v535_v13  ;;  %vm557_vm1 = vweird.f32 %v2101_v45 }
 0x17d   : > { %v624_v24 = vmul.f32 0.5, %v623_v15  ;;  %v620_v25 = vsel %vm619_vm4, %v1532_v44, %v616_v21 }
 0x17e   : > { %v544_v26 = vmul.f32 0.5, %v543_v22  ;;  %v2121_v27 = vmul.f32 %v620_v25, %v1997_v54  ;;  %v540_v44 = vsel %vm539_vm9, %v2076_v42, %v536_v51 }
 0x17f   : > { %v625_v28 = vsub.f32 1.5, %v624_v24  ;;  %v466_v29 = vpop.xlane.xlu1 %465  ;;  %v482_v31 = vpop.xlane.xlu0 %481  ;;  %719 = vmatmul.f32.gmra.mxu1 %v2115_v23  ;;  %v2150_v50 = vmul.f32 %v540_v44, %v1994_v52 }
 0x180   : > { %v2126_v36 = vpop.eup %1537  ;;  %746 = vmatmul.f32.gmra.mxu3 %v2121_v27  ;;  %v2130_v33 = vadd.f32 1e-12, %v466_v29  ;;  %v2132_v54 = vadd.f32 1e-12, %v482_v31  ;;  %v545_v40 = vsub.f32 1.5, %v544_v26 }
 0x181   : > { %v1540_v34 = vpop.eup %1539  ;;  %v552_v35 = vmul.f32 %v2126_v36, %v2101_v45  ;;  %v626_v37 = vmul.f32 %v1534_v5, %v625_v28  ;;  %vm558_vm2 = vweird.f32 %v2126_v36 }
 0x182   : > { %v632_v39 = vmul.f32 %v1540_v34, %v2103_v7  ;;  %1541 = vrsqrt.f32 %v2130_v33  ;;  %v546_v38 = vmul.f32 %v2105_v47, %v545_v40  ;;  %vm638_vm15 = vweird.f32 %v1540_v34  ;;  %vm559_vm5 = vmor %vm557_vm1, %vm558_vm2 }
 0x183   : > { %v553_v43 = vmul.f32 %v2126_v36, %v552_v35  ;;  %1543 = vrsqrt.f32 %v2132_v54  ;;  %v630_v46 = vsel %vm629_vm10, %v1534_v5, %v626_v37  ;;  %vm639_vm0 = vmor %vm637_vm13, %vm638_vm15  ;;  %vm647_vm3 = vweird.f32 %v2132_v54 }
 0x184   : > { %v633_v48 = vmul.f32 %v1540_v34, %v632_v39  ;;  %v2146_v16 = vmul.f32 %v630_v46, %v2009_v0  ;;  %v550_v1 = vsel %vm549_vm14, %v2105_v47, %v546_v38  ;;  %vm567_vm9 = vweird.f32 %v2130_v33 }
 0x185   : > { %v554_v53 = vmul.f32 0.5, %v553_v43  ;;  %v2170_v11 = vmul.f32 %v550_v1, %v2006_v61  ;;  %vm897_vm1 = vcmask 1041409   ;;  %vm899_vm2 = vcmask 1042434  }
 0x186   : > { %v634_v49 = vmul.f32 0.5, %v633_v48 }
 0x187   : > { %v484_v55 = vpop.xlane.xlu2 %483  ;;  %v468_v56 = vpop.xlane.xlu0 %467  ;;  %722 = vmatmul.f32.gmra.mxu1 %v2150_v50  ;;  %v555_v2 = vsub.f32 1.5, %v554_v53 }
 0x188   : > { %v2154_v57 = vpop.eup %1541  ;;  %v635_v42 = vsub.f32 1.5, %v634_v49  ;;  %749 = vmatmul.f32.gmra.mxu3 %v2146_v16  ;;  %v500_v0 = vadd.f32 1e-12, %v484_v55  ;;  %v2158_v58 = vadd.f32 1e-12, %v468_v56 }
 0x189   : > { %v1544_v62 = vpop.eup %1543  ;;  %v562_v52 = vmul.f32 %v2154_v57, %v2130_v33  ;;  %v556_v47 = vmul.f32 %v2126_v36, %v555_v2  ;;  %vm568_vm10 = vweird.f32 %v2154_v57  ;;  %v2218_v49 = vld [vmem:[%s2511_s5] ss:$0 sm:$0xff] }
 0x18a   : > { %v642_v63 = vmul.f32 %v1544_v62, %v2132_v54  ;;  %1545 = vrsqrt.f32 %v500_v0  ;;  %v636_v5 = vmul.f32 %v1540_v34, %v635_v42  ;;  %vm648_vm4 = vweird.f32 %v1544_v62  ;;  %vm569_vm12 = vmor %vm567_vm9, %vm568_vm10 }
 0x18b   : > { %v563_v4 = vmul.f32 %v2154_v57, %v562_v52  ;;  %1547 = vrsqrt.f32 %v2158_v58  ;;  %v560_v24 = vsel %vm559_vm5, %v2126_v36, %v556_v47  ;;  %vm649_vm6 = vmor %vm647_vm3, %vm648_vm4  ;;  %vm657_vm7 = vweird.f32 %v500_v0 }
 0x18c   : > { %v643_v9 = vmul.f32 %v1544_v62, %v642_v63  ;;  %v640_v7 = vsel %vm639_vm0, %v1540_v34, %v636_v5  ;;  %v2188_v31 = vmul.f32 %v560_v24, %v2016_v6  ;;  %vm577_vm13 = vweird.f32 %v2158_v58 }
 0x18d   : > { %v2173_v41 = vmul.f32 %v640_v7, %v2019_v8  ;;  %v564_v13 = vmul.f32 0.5, %v563_v4  ;;  %vm874_vm0 = vcmask 130112   ;;  %vm901_vm3 = vcmask 1043459  }
 0x18e   : > { %v644_v10 = vmul.f32 0.5, %v643_v9  ;;  %vm903_vm4 = vcmask 1044484   ;;  %vm905_vm5 = vcmask 1045509  }
 0x18f   : > { %725 = vmatmul.f32.gmra.mxu1 %v2170_v11  ;;  %v565_v21 = vsub.f32 1.5, %v564_v13 }
 0x190   : > { %v1546_v17 = vpop.eup %1545  ;;  %v645_v15 = vsub.f32 1.5, %v644_v10  ;;  %752 = vmatmul.f32.gmra.mxu3 %v2173_v41 }
 0x191   : > { %v1548_v61 = vpop.eup %1547  ;;  %v652_v19 = vmul.f32 %v1546_v17, %v500_v0  ;;  %vm658_vm8 = vweird.f32 %v1546_v17  ;;  %v566_v34 = vmul.f32 %v2154_v57, %v565_v21 }
 0x192   : > { %v572_v8 = vmul.f32 %v1548_v61, %v2158_v58  ;;  %v646_v45 = vmul.f32 %v1544_v62, %v645_v15  ;;  %vm659_vm11 = vmor %vm657_vm7, %vm658_vm8  ;;  %vm578_vm14 = vweird.f32 %v1548_v61  ;;  %vm909_vm7 = vcmask 1047559  }
 0x193   : > { %v653_v22 = vmul.f32 %v1546_v17, %v652_v19  ;;  %v570_v35 = vsel %vm569_vm12, %v2154_v57, %v566_v34  ;;  %vm579_vm15 = vmor %vm577_vm13, %vm578_vm14  ;;  %vm912_vm8 = vcmask 130048  }
 0x194   : > { %v573_v25 = vmul.f32 %v1548_v61, %v572_v8  ;;  %v650_v26 = vsel %vm649_vm6, %v1544_v62, %v646_v45  ;;  %v2199_v37 = vmul.f32 %v570_v35, %v2026_v12  ;;  %v2211_v12 = vld [vmem:[%s2510_s4] ss:$0 sm:$0xff]  ;;  %vm907_vm6 = vcmask 1046534  }
 0x195   : > { %v654_v28 = vmul.f32 0.5, %v653_v22  ;;  %v2184_v29 = vmul.f32 %v650_v26, %v2029_v14 }
 0x196   : > { %v574_v54 = vmul.f32 0.5, %v573_v25 }
 0x197   : > { %v655_v51 = vsub.f32 1.5, %v654_v28  ;;  %728 = vmatmul.f32.gmra.mxu1 %v2188_v31 }
 0x198   : > { %755 = vmatmul.f32.gmra.mxu3 %v2184_v29  ;;  %v575_v14 = vsub.f32 1.5, %v574_v54 }
 0x199   : > { %v656_v36 = vmul.f32 %v1546_v17, %v655_v51 }
 0x19a   : > { %v576_v40 = vmul.f32 %v1548_v61, %v575_v14 }
 0x19b   : > { %v660_v33 = vsel %vm659_vm11, %v1546_v17, %v656_v36 }
 0x19c   : > { %v2196_v6 = vmul.f32 %v660_v33, %v2039_v20  ;;  %v580_v39 = vsel %vm579_vm15, %v1548_v61, %v576_v40 }
 0x19d   : > { %v2205_v43 = vmul.f32 %v580_v39, %v2036_v18 }
 0x19f   : > { %731 = vmatmul.f32.gmra.mxu1 %v2199_v37 }
 0x1a0   : > { %758 = vmatmul.f32.gmra.mxu3 %v2196_v6 }
 0x1a7   : > { %734 = vmatmul.f32.gmra.mxu1 %v2205_v43 }
 0x1e9   : > { %v738_v20 = vpop.f32.mrf.mxu3 }
 0x1ea   : > { %v739_v44 = vadd.f32 %v2211_v12, %v738_v20  ;;  %v1781_v20 = vmov 0  }
 0x1eb   : > { %1510 = vset.pattern.permute.xlu2 %v1781_v20  ;;  %1512 = vset.pattern.permute.xlu1 %v1781_v20 }
 0x1ec   : > { %1549 = vtanh.f32 %v739_v44  ;;  %v714_v46 = vpop.f32.mrf.mxu1  ;;  %1511 = vset.pattern.permute.xlu0 %v1781_v20 }
 0x1ed   : > { %v715_v48 = vadd.f32 %v2211_v12, %v714_v46 }
 0x1ef   : > { %1551 = vtanh.f32 %v715_v48 }
 0x1f1   : > { %v741_v38 = vpop.f32.mrf.mxu3 }
 0x1f2   : > { %v1550_v18 = vpop.eup %1549  ;;  %v742_v53 = vadd.f32 %v2211_v12, %v741_v38 }
 0x1f3   : > { %v790_v55 = vmul.f32 %v1550_v18, %v2218_v49 }
 0x1f4   : > { %v717_v56 = vpop.f32.mrf.mxu1  ;;  %1553 = vtanh.f32 %v742_v53 }
 0x1f5   : > { %814 = vadd.xlane.f32.xlu0 %v790_v55  ;;  %v1552_v57 = vpop.eup %1551  ;;  %v718_v42 = vadd.f32 %v2211_v12, %v717_v56 }
 0x1f6   : > { %v782_v0 = vmul.f32 %v1552_v57, %v2218_v49 }
 0x1f7   : > { %1555 = vtanh.f32 %v718_v42 }
 0x1f8   : > { %798 = vadd.xlane.f32.xlu1 %v782_v0 }
 0x1f9   : > { %v744_v58 = vpop.f32.mrf.mxu3 }
 0x1fa   : > { %v1554_v62 = vpop.eup %1553  ;;  %v745_v26 = vadd.f32 %v2211_v12, %v744_v58 }
 0x1fb   : > { %v791_v4 = vmul.f32 %v1554_v62, %v2218_v49 }
 0x1fc   : > { %v720_v52 = vpop.f32.mrf.mxu1 }
 0x1fd   : > { %v1556_v63 = vpop.eup %1555  ;;  %v721_v1 = vadd.f32 %v2211_v12, %v720_v52 }
 0x1fe   : > { %v783_v2 = vmul.f32 %v1556_v63, %v2218_v49 }
 0x1ff   : > { %1557 = vtanh.f32 %v721_v1 }
 0x200   : > { %800 = vadd.xlane.f32.xlu2 %v783_v2  ;;  %816 = vadd.xlane.f32.xlu1 %v791_v4 }
 0x203   : > { %v747_v5 = vpop.f32.mrf.mxu3 }
 0x204   : > { %v723_v9 = vpop.f32.mrf.mxu1  ;;  %v748_v40 = vadd.f32 %v2211_v12, %v747_v5 }
 0x205   : > { %v1558_v7 = vpop.eup %1557  ;;  %v724_v10 = vadd.f32 %v2211_v12, %v723_v9 }
 0x206   : > { %v784_v13 = vmul.f32 %v1558_v7, %v2218_v49 }
 0x207   : > { %1559 = vtanh.f32 %v724_v10 }
 0x208   : > { %802 = vadd.xlane.f32.xlu0 %v784_v13 }
 0x20b   : > { %v750_v47 = vpop.f32.mrf.mxu3 }
 0x20c   : > { %v726_v17 = vpop.f32.mrf.mxu1  ;;  %v751_v39 = vadd.f32 %v2211_v12, %v750_v47 }
 0x20d   : > { %v1560_v15 = vpop.eup %1559  ;;  %v727_v61 = vadd.f32 %v2211_v12, %v726_v17 }
 0x20e   : > { %v785_v19 = vmul.f32 %v1560_v15, %v2218_v49 }
 0x20f   : > { %1561 = vtanh.f32 %v727_v61 }
 0x210   : > { %804 = vadd.xlane.f32.xlu1 %v785_v19 }
 0x213   : > { %v753_v8 = vpop.f32.mrf.mxu3 }
 0x214   : > { %v754_v45 = vadd.f32 %v2211_v12, %v753_v8  ;;  %v729_v21 = vpop.f32.mrf.mxu1 }
 0x215   : > { %v1562_v22 = vpop.eup %1561  ;;  %v730_v24 = vadd.f32 %v2211_v12, %v729_v21  ;;  %v869_v21 = vlaneseq }
 0x216   : > { %1563 = vtanh.f32 %v754_v45  ;;  %v786_v25 = vmul.f32 %v1562_v22, %v2218_v49 }
 0x217   : > { %1565 = vtanh.f32 %v730_v24  ;;  %v2250_v22 = vand.u32 127, %v869_v21 }
 0x218   : > { %806 = vadd.xlane.f32.xlu2 %v786_v25  ;;  %1567 = vtanh.f32 %v745_v26 }
 0x21b   : > { %v756_v28 = vpop.f32.mrf.mxu3 }
 0x21c   : > { %v1564_v51 = vpop.eup %1563  ;;  %v757_v54 = vadd.f32 %v2211_v12, %v756_v28  ;;  %v732_v34 = vpop.f32.mrf.mxu1  ;;  %v2253_v28 = vadd.s32 4294967288, %v2250_v22 }
 0x21d   : > { %v795_v36 = vmul.f32 %v1564_v51, %v2218_v49  ;;  %v1566_v14 = vpop.eup %1565  ;;  %v733_v35 = vadd.f32 %v2211_v12, %v732_v34 }
 0x21e   : > { %1569 = vtanh.f32 %v757_v54  ;;  %v787_v33 = vmul.f32 %v1566_v14, %v2218_v49  ;;  %v1568_v44 = vpop.eup %1567 }
 0x21f   : > { %1571 = vtanh.f32 %v733_v35  ;;  %v792_v42 = vmul.f32 %v1568_v44, %v2218_v49 }
 0x220   : > { %808 = vadd.xlane.f32.xlu0 %v787_v33  ;;  %1573 = vtanh.f32 %v748_v40 }
 0x221   : > { %1575 = vtanh.f32 %v751_v39 }
 0x223   : > { %v759_v46 = vpop.f32.mrf.mxu3 }
 0x224   : > { %v1570_v48 = vpop.eup %1569  ;;  %v760_v18 = vadd.f32 %v2211_v12, %v759_v46  ;;  %v735_v38 = vpop.f32.mrf.mxu1 }
 0x225   : > { %v796_v53 = vmul.f32 %v1570_v48, %v2218_v49  ;;  %v1572_v55 = vpop.eup %1571  ;;  %v736_v56 = vadd.f32 %v2211_v12, %v735_v38  ;;  %v1516_v12 = vld [vmem:[#allocation2] ss:$0 sm:$0xff] }
 0x226   : > { %1577 = vtanh.f32 %v760_v18  ;;  %v788_v57 = vmul.f32 %v1572_v55, %v2218_v49  ;;  %v1574_v0 = vpop.eup %1573 }
 0x227   : > { %1579 = vtanh.f32 %v736_v56  ;;  %v1576_v58 = vpop.eup %1575  ;;  %v793_v1 = vmul.f32 %v1574_v0, %v2218_v49 }
 0x228   : > { %810 = vadd.xlane.f32.xlu1 %v788_v57  ;;  %818 = vadd.xlane.f32.xlu0 %v792_v42  ;;  %v794_v2 = vmul.f32 %v1576_v58, %v2218_v49 }
 0x22c   : > { %v1578_v62 = vpop.eup %1577 }
 0x22d   : > { %v797_v52 = vmul.f32 %v1578_v62, %v2218_v49  ;;  %v1580_v63 = vpop.eup %1579 }
 0x22e   : > { %v789_v4 = vmul.f32 %v1580_v63, %v2218_v49 }
 0x230   : > { %820 = vadd.xlane.f32.xlu1 %v793_v1  ;;  %822 = vadd.xlane.f32.xlu0 %v794_v2 }
 0x231   : > { %812 = vadd.xlane.f32.xlu2 %v789_v4 }
 0x238   : > { %824 = vadd.xlane.f32.xlu1 %v795_v36  ;;  %826 = vadd.xlane.f32.xlu0 %v796_v53 }
 0x240   : > { %828 = vadd.xlane.f32.xlu1 %v797_v52 }
 0x249   : > { %834 = vperm.xlu2 %1510, %v1516_v12  }
 0x268   : > { %v815_v9 = vpop.xlane.xlu0 %814 }
 0x26b   : > { %v799_v5 = vpop.xlane.xlu1 %798 }
 0x273   : > { %v817_v7 = vpop.xlane.xlu1 %816  ;;  %v801_v17 = vpop.xlane.xlu2 %800 }
 0x27b   : > { %v803_v10 = vpop.xlane.xlu0 %802 }
 0x283   : > { %v805_v13 = vpop.xlane.xlu1 %804 }
 0x28b   : > { %v807_v19 = vpop.xlane.xlu2 %806 }
 0x293   : > { %v809_v47 = vpop.xlane.xlu0 %808 }
 0x29b   : > { %v811_v15 = vpop.xlane.xlu1 %810  ;;  %v819_v61 = vpop.xlane.xlu0 %818 }
 0x2a3   : > { %v821_v8 = vpop.xlane.xlu1 %820  ;;  %v823_v49 = vpop.xlane.xlu0 %822 }
 0x2a4   : > { %v813_v45 = vpop.xlane.xlu2 %812 }
 0x2ab   : > { %v825_v24 = vpop.xlane.xlu1 %824  ;;  %v827_v26 = vpop.xlane.xlu0 %826 }
 0x2ac   : > { %v835_v25 = vpop.permute.xlu2 %834 }
 0x2ad   : > { %v2255_v51 = vadd.f32 %v835_v25, %v799_v5  ;;  %v838_v54 = vadd.f32 %v835_v25, %v801_v17  ;;  %v2257_v34 = vadd.f32 %v835_v25, %v803_v10  ;;  %v2259_v36 = vadd.f32 %v835_v25, %v805_v13 }
 0x2ae   : > { %v841_v14 = vadd.f32 %v835_v25, %v807_v19  ;;  %v2261_v35 = vadd.f32 %v835_v25, %v809_v47  ;;  %v2263_v33 = vadd.f32 %v835_v25, %v827_v26  ;;  %v2265_v40 = vadd.f32 %v835_v25, %v811_v15 }
 0x2af   : > { %v2267_v39 = vadd.f32 %v835_v25, %v813_v45  ;;  %v2269_v20 = vadd.f32 %v835_v25, %v815_v9  ;;  %v2271_v44 = vadd.f32 %v835_v25, %v817_v7  ;;  %v2273_v46 = vadd.f32 %v835_v25, %v819_v61 }
 0x2b0   : > { %v848_v48 = vadd.f32 %v835_v25, %v821_v8  ;;  %v871_v18 = vperm.slane %v2255_v51, %v2250_v22  ;;  %v873_v38 = vperm.slane %v838_v54, %v2253_v28  ;;  %v876_v53 = vperm.slane %v2257_v34, %v2250_v22 }
 0x2b1   : > { %v877_v55 = vperm.slane %v2259_v36, %v2253_v28  ;;  %v2282_v56 = vadd.f32 %v835_v25, %v823_v49  ;;  %v2284_v57 = vadd.f32 %v835_v25, %v825_v24  ;;  %v879_v42 = vperm.slane %v841_v14, %v2250_v22 }
 0x2b2   : > { %v880_v0 = vperm.slane %v2261_v35, %v2253_v28  ;;  %v875_v62 = vsel %vm874_vm0, %v873_v38, %v871_v18  ;;  %v882_v63 = vperm.slane %v2265_v40, %v2250_v22  ;;  %v883_v1 = vperm.slane %v2267_v39, %v2253_v28 }
 0x2b3   : > { %v829_v58 = vpop.xlane.xlu1 %828  ;;  %v878_v52 = vsel %vm874_vm0, %v877_v55, %v876_v53  ;;  %v885_v12 = vperm.slane %v2269_v20, %v2250_v22  ;;  %v886_v5 = vperm.slane %v2271_v44, %v2253_v28  ;;  %v888_v9 = vperm.slane %v2273_v46, %v2250_v22 }
 0x2b4   : > { %v2295_v2 = vadd.f32 %v835_v25, %v829_v58  ;;  %v881_v4 = vsel %vm874_vm0, %v880_v0, %v879_v42  ;;  %v889_v7 = vperm.slane %v848_v48, %v2253_v28  ;;  %v891_v13 = vperm.slane %v2282_v56, %v2250_v22 }
 0x2b5   : > { %v892_v47 = vperm.slane %v2284_v57, %v2253_v28  ;;  %v898_v17 = vsel %vm897_vm1, %v878_v52, %v875_v62  ;;  %v894_v15 = vperm.slane %v2263_v33, %v2250_v22  ;;  %v884_v61 = vsel %vm874_vm0, %v883_v1, %v882_v63 }
 0x2b6   : > { %v895_v10 = vperm.slane %v2295_v2, %v2253_v28  ;;  %v900_v19 = vsel %vm899_vm2, %v881_v4, %v898_v17  ;;  %v887_v8 = vsel %vm874_vm0, %v886_v5, %v885_v12  ;;  %v890_v45 = vsel %vm874_vm0, %v889_v7, %v888_v9 }
 0x2b7   : > { %v902_v49 = vsel %vm901_vm3, %v884_v61, %v900_v19  ;;  %v893_v25 = vsel %vm874_vm0, %v892_v47, %v891_v13 }
 0x2b8   : > { %v896_v21 = vsel %vm874_vm0, %v895_v10, %v894_v15  ;;  %v904_v24 = vsel %vm903_vm4, %v887_v8, %v902_v49 }
 0x2b9   : > { %v906_v26 = vsel %vm905_vm5, %v890_v45, %v904_v24 }
 0x2ba   : > { %v908_v18 = vsel %vm907_vm6, %v893_v25, %v906_v26 }
 0x2bb   : > { %v910_v38 = vsel %vm909_vm7, %v896_v21, %v908_v18 }
 0x2bc   : > { %v913_v53 = vsel %vm912_vm8, %v910_v38, -inf }
 0x2bd   : > { %914 = vmax.xlane.f32.xlu2 %v913_v53 }
 0x330   : > { %v2326_v55 = vpop.xlane.xlu2 %914 }
 0x331   : > { %v919_v42 = vperm.slane %v2326_v55, 2  ;;  %v917_v0 = vperm.slane %v2326_v55, 0  ;;  %v922_v63 = vperm.slane %v2326_v55, 5  ;;  %v918_v1 = vperm.slane %v2326_v55, 1 }
 0x332   : > { %v920_v17 = vperm.slane %v2326_v55, 3  ;;  %v921_v21 = vperm.slane %v2326_v55, 4  ;;  %v923_v38 = vperm.slane %v2326_v55, 6 }
 0x333   : > { %v937_v58 = vsub.f32 %v841_v14, %v919_v42  ;;  %v934_v62 = vsub.f32 %v838_v54, %v917_v0  ;;  %v933_v52 = vsub.f32 %v2255_v51, %v917_v0  ;;  %v944_v9 = vsub.f32 %v848_v48, %v922_v63 }
 0x334   : > { %v935_v7 = vsub.f32 %v2257_v34, %v918_v1  ;;  %v938_v14 = vsub.f32 %v2261_v35, %v919_v42  ;;  %v924_v51 = vperm.slane %v2326_v55, 7  ;;  %v936_v35 = vsub.f32 %v2259_v36, %v918_v1 }
 0x335   : > { %v957_v4 = vmul.f32 1.442695, %v937_v58  ;;  %v951_v12 = vmul.f32 1.442695, %v934_v62  ;;  %v949_v5 = vmul.f32 1.442695, %v933_v52  ;;  %v940_v61 = vsub.f32 %v2267_v39, %v920_v17 }
 0x336   : > { %v971_v54 = vmul.f32 1.442695, %v944_v9  ;;  %v953_v10 = vmul.f32 1.442695, %v935_v7  ;;  %v959_v47 = vmul.f32 1.442695, %v938_v14  ;;  %v947_v34 = vsub.f32 %v2263_v33, %v924_v51 }
 0x337   : > { %1581 = vpow2.f32 %v957_v4  ;;  %v955_v8 = vmul.f32 1.442695, %v936_v35  ;;  %v963_v45 = vmul.f32 1.442695, %v940_v61  ;;  %v939_v36 = vsub.f32 %v2265_v40, %v920_v17 }
 0x338   : > { %1583 = vpow2.f32 %v951_v12  ;;  %v977_v19 = vmul.f32 1.442695, %v947_v34  ;;  %v942_v39 = vsub.f32 %v2271_v44, %v921_v21  ;;  %v941_v40 = vsub.f32 %v2269_v20, %v921_v21 }
 0x339   : > { %1585 = vpow2.f32 %v949_v5  ;;  %v961_v25 = vmul.f32 1.442695, %v939_v36  ;;  %v945_v44 = vsub.f32 %v2282_v56, %v923_v38  ;;  %v943_v1 = vsub.f32 %v2273_v46, %v922_v63 }
 0x33a   : > { %1587 = vpow2.f32 %v971_v54  ;;  %v967_v18 = vmul.f32 1.442695, %v942_v39  ;;  %v965_v0 = vmul.f32 1.442695, %v941_v40  ;;  %v948_v20 = vsub.f32 %v2295_v2, %v924_v51 }
 0x33b   : > { %1589 = vpow2.f32 %v953_v10  ;;  %v973_v58 = vmul.f32 1.442695, %v945_v44  ;;  %v969_v4 = vmul.f32 1.442695, %v943_v1  ;;  %v946_v9 = vsub.f32 %v2284_v57, %v923_v38 }
 0x33c   : > { %1591 = vpow2.f32 %v959_v47  ;;  %v979_v56 = vmul.f32 1.442695, %v948_v20 }
 0x33d   : > { %v2338_v13 = vpop.eup %1581  ;;  %1593 = vpow2.f32 %v977_v19  ;;  %v975_v55 = vmul.f32 1.442695, %v946_v9 }
 0x33e   : > { %v2341_v15 = vpop.eup %1583  ;;  %1010 = vperm.xlu2 %1510, %v2338_v13   ;;  %1595 = vpow2.f32 %v955_v8 }
 0x33f   : > { %v2344_v48 = vpop.eup %1585  ;;  %1001 = vperm.xlu1 %1512, %v2341_v15   ;;  %1597 = vpow2.f32 %v963_v45 }
 0x340   : > { %998 = vperm.xlu0 %1511, %v2344_v48   ;;  %v2351_v49 = vpop.eup %1587  ;;  %1599 = vpow2.f32 %v961_v25 }
 0x341   : > { %v2354_v24 = vpop.eup %1589  ;;  %1601 = vpow2.f32 %v967_v18 }
 0x342   : > { %v2357_v33 = vpop.eup %1591  ;;  %1603 = vpow2.f32 %v965_v0 }
 0x343   : > { %v2363_v26 = vpop.eup %1593  ;;  %1605 = vpow2.f32 %v973_v58 }
 0x344   : > { %v2366_v53 = vpop.eup %1595  ;;  %1607 = vpow2.f32 %v969_v4 }
 0x345   : > { %v2369_v42 = vpop.eup %1597  ;;  %1609 = vpow2.f32 %v979_v56 }
 0x346   : > { %1031 = vperm.xlu2 %1510, %v2351_v49   ;;  %v2375_v62 = vpop.eup %1599  ;;  %1611 = vpow2.f32 %v975_v55 }
 0x347   : > { %1004 = vperm.xlu1 %1512, %v2354_v24   ;;  %v2377_v52 = vpop.eup %1601 }
 0x348   : > { %1013 = vperm.xlu0 %1511, %v2357_v33   ;;  %v2385_v12 = vpop.eup %1603 }
 0x349   : > { %v2387_v5 = vpop.eup %1605 }
 0x34a   : > { %v2392_v7 = vpop.eup %1607 }
 0x34b   : > { %v2394_v46 = vpop.eup %1609 }
 0x34c   : > { %v2398_v2 = vpop.eup %1611 }
 0x34e   : > { %1040 = vperm.xlu2 %1510, %v2363_v26  }
 0x34f   : > { %1007 = vperm.xlu1 %1512, %v2366_v53  }
 0x350   : > { %1019 = vperm.xlu0 %1511, %v2369_v42  }
 0x357   : > { %1016 = vperm.xlu1 %1512, %v2375_v62  }
 0x358   : > { %1025 = vperm.xlu0 %1511, %v2377_v52  }
 0x35f   : > { %1022 = vperm.xlu1 %1512, %v2385_v12  }
 0x360   : > { %1034 = vperm.xlu0 %1511, %v2387_v5  }
 0x367   : > { %1028 = vperm.xlu1 %1512, %v2392_v7  }
 0x368   : > { %1043 = vperm.xlu0 %1511, %v2394_v46  }
 0x36f   : > { %1037 = vperm.xlu1 %1512, %v2398_v2  }
 0x398   : > { %v1011_v34 = vpop.permute.xlu2 %1010 }
 0x399   : > { %v1051_v1 = vperm.slane %v1011_v34, %v2250_v22 }
 0x3a0   : > { %v1032_v19 = vpop.permute.xlu2 %1031 }
 0x3a1   : > { %v1061_v9 = vperm.slane %v1032_v19, %v2253_v28 }
 0x3b1   : > { %v1002_v63 = vpop.permute.xlu1 %1001 }
 0x3b2   : > { %v999_v14 = vpop.permute.xlu0 %998  ;;  %v1046_v45 = vperm.slane %v1002_v63, %v2253_v28  ;;  %v1041_v63 = vpop.permute.xlu2 %1040 }
 0x3b3   : > { %v1045_v21 = vperm.slane %v999_v14, %v2250_v22  ;;  %v1066_v19 = vperm.slane %v1041_v63, %v2250_v22 }
 0x3b5   : > { %v1047_v44 = vsel %vm874_vm0, %v1046_v45, %v1045_v21 }
 0x3b9   : > { %v1005_v54 = vpop.permute.xlu1 %1004 }
 0x3ba   : > { %v1014_v51 = vpop.permute.xlu0 %1013  ;;  %v1048_v36 = vperm.slane %v1005_v54, %v2250_v22 }
 0x3bb   : > { %v1052_v38 = vperm.slane %v1014_v51, %v2253_v28 }
 0x3bd   : > { %v1053_v14 = vsel %vm874_vm0, %v1052_v38, %v1051_v1 }
 0x3c1   : > { %v1008_v57 = vpop.permute.xlu1 %1007 }
 0x3c2   : > { %v1020_v10 = vpop.permute.xlu0 %1019  ;;  %v1049_v8 = vperm.slane %v1008_v57, %v2253_v28 }
 0x3c3   : > { %v1055_v0 = vperm.slane %v1020_v10, %v2253_v28 }
 0x3c4   : > { %v1050_v25 = vsel %vm874_vm0, %v1049_v8, %v1048_v36 }
 0x3c5   : > { %v1069_v20 = vsel %vm897_vm1, %v1050_v25, %v1047_v44 }
 0x3c6   : > { %v1070_v51 = vsel %vm899_vm2, %v1053_v14, %v1069_v20 }
 0x3c9   : > { %v1017_v47 = vpop.permute.xlu1 %1016 }
 0x3ca   : > { %v1026_v17 = vpop.permute.xlu0 %1025  ;;  %v1054_v18 = vperm.slane %v1017_v47, %v2250_v22 }
 0x3cb   : > { %v1058_v4 = vperm.slane %v1026_v17, %v2253_v28 }
 0x3cc   : > { %v1056_v55 = vsel %vm874_vm0, %v1055_v0, %v1054_v18 }
 0x3cd   : > { %v1071_v34 = vsel %vm901_vm3, %v1056_v55, %v1070_v51 }
 0x3d1   : > { %v1023_v35 = vpop.permute.xlu1 %1022 }
 0x3d2   : > { %v1035_v61 = vpop.permute.xlu0 %1034  ;;  %v1057_v40 = vperm.slane %v1023_v35, %v2250_v22 }
 0x3d3   : > { %v1063_v17 = vperm.slane %v1035_v61, %v2250_v22 }
 0x3d4   : > { %v1059_v54 = vsel %vm874_vm0, %v1058_v4, %v1057_v40 }
 0x3d5   : > { %v1072_v8 = vsel %vm903_vm4, %v1059_v54, %v1071_v34 }
 0x3d9   : > { %v1029_v39 = vpop.permute.xlu1 %1028 }
 0x3da   : > { %v1060_v58 = vperm.slane %v1029_v39, %v2250_v22  ;;  %v1044_v56 = vpop.permute.xlu0 %1043 }
 0x3db   : > { %v1067_v10 = vperm.slane %v1044_v56, %v2253_v28 }
 0x3dc   : > { %v1062_v57 = vsel %vm874_vm0, %v1061_v9, %v1060_v58 }
 0x3dd   : > { %v1073_v21 = vsel %vm905_vm5, %v1062_v57, %v1072_v8  ;;  %v1068_v36 = vsel %vm874_vm0, %v1067_v10, %v1066_v19 }
 0x3e1   : > { %v1038_v47 = vpop.permute.xlu1 %1037 }
 0x3e2   : > { %v1064_v35 = vperm.slane %v1038_v47, %v2253_v28 }
 0x3e4   : > { %v1065_v45 = vsel %vm874_vm0, %v1064_v35, %v1063_v17 }
 0x3e5   : > { %v1074_v39 = vsel %vm907_vm6, %v1065_v45, %v1073_v21 }
 0x3e6   : > { %v1075_v25 = vsel %vm909_vm7, %v1068_v36, %v1074_v39 }
 0x3e7   : > { %v1077_v18 = vsel %vm912_vm8, %v1075_v25, 0.0 }
 0x3e8   : > { %1078 = vadd.xlane.f32.xlu1 %v1077_v18 }
 0x45b   : > { %v1079_v61 = vpop.xlane.xlu1 %1078 }
 0x45c   : > { %1613 = vrcp.f32 %v1079_v61 }
 0x462   : > { %v1614_v28 = vpop.eup %1613 }
 0x463   : > { %v1087_v38 = vperm.slane %v1614_v28, 5  ;;  %v1082_v22 = vperm.slane %v1614_v28, 0  ;;  %v1083_v58 = vperm.slane %v1614_v28, 1  ;;  %v1084_v4 = vperm.slane %v1614_v28, 2 }
 0x464   : > { %v1086_v55 = vperm.slane %v1614_v28, 4  ;;  %v1088_v63 = vperm.slane %v1614_v28, 6  ;;  %v1089_v14 = vperm.slane %v1614_v28, 7 }
 0x465   : > { %v1109_v40 = vmul.f32 %v2351_v49, %v1087_v38  ;;  %v1099_v44 = vmul.f32 %v2341_v15, %v1082_v22  ;;  %v1098_v0 = vmul.f32 %v2344_v48, %v1082_v22  ;;  %v1101_v1 = vmul.f32 %v2366_v53, %v1083_v58 }
 0x466   : > { %v1100_v20 = vmul.f32 %v2354_v24, %v1083_v58  ;;  %v1103_v56 = vmul.f32 %v2357_v33, %v1084_v4  ;;  %v1102_v9 = vmul.f32 %v2338_v13, %v1084_v4  ;;  %v1085_v15 = vperm.slane %v1614_v28, 3 }
 0x467   : > { %1171 = vperm.xlu1 %1512, %v1109_v40   ;;  %1121 = vperm.xlu0 %1511, %v1099_v44   ;;  %v1107_v53 = vmul.f32 %v2377_v52, %v1086_v55  ;;  %v1106_v24 = vmul.f32 %v2385_v12, %v1086_v55  ;;  %v1110_v33 = vmul.f32 %v2387_v5, %v1088_v63 }
 0x468   : > { %1116 = vperm.xlu2 %1510, %v1098_v0   ;;  %v1105_v48 = vmul.f32 %v2369_v42, %v1085_v15  ;;  %v1104_v49 = vmul.f32 %v2375_v62, %v1085_v15  ;;  %v1108_v13 = vmul.f32 %v2392_v7, %v1087_v38  ;;  %v1112_v42 = vmul.f32 %v2363_v26, %v1089_v14 }
 0x469   : > { %v1111_v62 = vmul.f32 %v2398_v2, %v1088_v63  ;;  %v1113_v52 = vmul.f32 %v2394_v46, %v1089_v14 }
 0x46f   : > { %1131 = vperm.xlu0 %1511, %v1101_v1  }
 0x470   : > { %1126 = vperm.xlu2 %1510, %v1100_v20  }
 0x477   : > { %1141 = vperm.xlu0 %1511, %v1103_v56  }
 0x478   : > { %1136 = vperm.xlu2 %1510, %v1102_v9  }
 0x47f   : > { %1151 = vperm.xlu0 %1511, %v1105_v48  }
 0x480   : > { %1146 = vperm.xlu2 %1510, %v1104_v49  }
 0x487   : > { %1161 = vperm.xlu0 %1511, %v1107_v53  }
 0x488   : > { %1156 = vperm.xlu2 %1510, %v1106_v24  }
 0x48f   : > { %1176 = vperm.xlu0 %1511, %v1110_v33  }
 0x490   : > { %1166 = vperm.xlu2 %1510, %v1108_v13  }
 0x497   : > { %1186 = vperm.xlu0 %1511, %v1112_v42  }
 0x498   : > { %1181 = vperm.xlu2 %1510, %v1111_v62  }
 0x4a0   : > { %1191 = vperm.xlu2 %1510, %v1113_v52  }
 0x4c2   : > { %v1117_v12 = vpop.permute.xlu2 %1116 }
 0x4c3   : > { %v1194_v21 = vmul.f32 %v1117_v12, %v2070_v32 }
 0x4ca   : > { %v1127_v54 = vpop.permute.xlu2 %1126 }
 0x4cb   : > { %v1196_v26 = vmul.f32 %v1127_v54, %v2115_v23 }
 0x4d2   : > { %v1137_v51 = vpop.permute.xlu2 %1136 }
 0x4d3   : > { %v1198_v8 = vmul.f32 %v1137_v51, %v2170_v11 }
 0x4d9   : > { %v1122_v57 = vpop.permute.xlu0 %1121  ;;  %v1172_v18 = vpop.permute.xlu1 %1171 }
 0x4da   : > { %v1147_v10 = vpop.permute.xlu2 %1146  ;;  %v1195_v19 = vmul.f32 %v1122_v57, %v2092_v59  ;;  %v1205_v11 = vmul.f32 %v1172_v18, %v2121_v27 }
 0x4db   : > { %v1200_v36 = vmul.f32 %v1147_v10, %v2199_v37 }
 0x4dc   : > { %v1210_v25 = vadd.f32 %v1195_v19, %v1194_v21 }
 0x4de   : > { %v1211_v38 = vrot.slane %v1210_v25, 4 }
 0x4e0   : > { %v1212_v1 = vadd.f32 %v1211_v38, %v1210_v25 }
 0x4e1   : > { %v1132_v5 = vpop.permute.xlu0 %1131 }
 0x4e2   : > { %v1157_v47 = vpop.permute.xlu2 %1156  ;;  %v1197_v34 = vmul.f32 %v1132_v5, %v2150_v50  ;;  %v1213_v27 = vrot.slane %v1212_v1, 2 }
 0x4e4   : > { %v1217_v45 = vadd.f32 %v1197_v34, %v1196_v26  ;;  %v1214_v14 = vadd.f32 %v1213_v27, %v1212_v1 }
 0x4e6   : > { %v1218_v61 = vrot.slane %v1217_v45, 4  ;;  %v1215_v5 = vrot.slane %v1214_v14, 1 }
 0x4e8   : > { %v1219_v40 = vadd.f32 %v1218_v61, %v1217_v45 }
 0x4e9   : > { %v1142_v7 = vpop.permute.xlu0 %1141 }
 0x4ea   : > { %v1199_v2 = vmul.f32 %v1142_v7, %v2188_v31  ;;  %v1167_v35 = vpop.permute.xlu2 %1166  ;;  %v1202_v31 = vmul.f32 %v1157_v47, %v2052_v3  ;;  %v1220_v4 = vrot.slane %v1219_v40, 2 }
 0x4eb   : > { %v1204_v28 = vmul.f32 %v1167_v35, %v2095_v60 }
 0x4ec   : > { %v1224_v39 = vadd.f32 %v1199_v2, %v1198_v8  ;;  %v1221_v55 = vadd.f32 %v1220_v4, %v1219_v40 }
 0x4ed   : > { %v1245_v44 = vadd.f32 %v1205_v11, %v1204_v28 }
 0x4ee   : > { %v1222_v52 = vrot.slane %v1221_v55, 1 }
 0x4ef   : > { %v1246_v9 = vrot.slane %v1245_v44, 4 }
 0x4f0   : > { %v1223_v26 = vadd.f32 %v1222_v52, %v1221_v55 }
 0x4f1   : > { %v1152_v17 = vpop.permute.xlu0 %1151  ;;  %v1247_v24 = vadd.f32 %v1246_v9, %v1245_v44 }
 0x4f2   : > { %v1201_v46 = vmul.f32 %v1152_v17, %v2205_v43  ;;  %v1225_v43 = vrot.slane %v1224_v39, 4  ;;  %v1182_v37 = vpop.permute.xlu2 %1181 }
 0x4f3   : > { %v1207_v60 = vmul.f32 %v1182_v37, %v2173_v41  ;;  %v1248_v51 = vrot.slane %v1247_v24, 2 }
 0x4f4   : > { %v1231_v50 = vadd.f32 %v1201_v46, %v1200_v36  ;;  %v1226_v58 = vadd.f32 %v1225_v43, %v1224_v39  ;;  %v1216_v46 = vadd.f32 %v1215_v5, %v1214_v14 }
 0x4f5   : > { %v1249_v2 = vadd.f32 %v1248_v51, %v1247_v24 }
 0x4f6   : > { %v1232_v22 = vrot.slane %v1231_v50, 4  ;;  %v1227_v15 = vrot.slane %v1226_v58, 2  ;;  %v1274_v36 = vsel %vm897_vm1, %v1223_v26, %v1216_v46 }
 0x4f8   : > { %v1233_v20 = vadd.f32 %v1232_v22, %v1231_v50  ;;  %v1228_v33 = vadd.f32 %v1227_v15, %v1226_v58 }
 0x4f9   : > { %v1162_v23 = vpop.permute.xlu0 %1161 }
 0x4fa   : > { %v1203_v59 = vmul.f32 %v1162_v23, %v2067_v30  ;;  %v1234_v48 = vrot.slane %v1233_v20, 2  ;;  %v1192_v13 = vpop.permute.xlu2 %1191  ;;  %v1229_v10 = vrot.slane %v1228_v33, 1 }
 0x4fb   : > { %v1209_v41 = vmul.f32 %v1192_v13, %v2196_v6 }
 0x4fc   : > { %v1238_v32 = vadd.f32 %v1203_v59, %v1202_v31  ;;  %v1235_v42 = vadd.f32 %v1234_v48, %v1233_v20  ;;  %v1230_v19 = vadd.f32 %v1229_v10, %v1228_v33 }
 0x4fe   : > { %v1239_v0 = vrot.slane %v1238_v32, 4  ;;  %v1236_v47 = vrot.slane %v1235_v42, 1  ;;  %v1275_v25 = vsel %vm899_vm2, %v1230_v19, %v1274_v36 }
 0x500   : > { %v1240_v56 = vadd.f32 %v1239_v0, %v1238_v32  ;;  %v1237_v8 = vadd.f32 %v1236_v47, %v1235_v42 }
 0x501   : > { %v1177_v3 = vpop.permute.xlu0 %1176 }
 0x502   : > { %v1206_v30 = vmul.f32 %v1177_v3, %v2146_v16  ;;  %v1241_v53 = vrot.slane %v1240_v56, 2  ;;  %v1276_v50 = vsel %vm901_vm3, %v1237_v8, %v1275_v25 }
 0x504   : > { %v1252_v49 = vadd.f32 %v1207_v60, %v1206_v30  ;;  %v1242_v12 = vadd.f32 %v1241_v53, %v1240_v56 }
 0x506   : > { %v1253_v63 = vrot.slane %v1252_v49, 4  ;;  %v1243_v34 = vrot.slane %v1242_v12, 1 }
 0x508   : > { %v1254_v62 = vadd.f32 %v1253_v63, %v1252_v49  ;;  %v1244_v6 = vadd.f32 %v1243_v34, %v1242_v12 }
 0x509   : > { %v1187_v54 = vpop.permute.xlu0 %1186 }
 0x50a   : > { %v1255_v16 = vrot.slane %v1254_v62, 2  ;;  %v1208_v57 = vmul.f32 %v1187_v54, %v2184_v29  ;;  %v1250_v29 = vrot.slane %v1249_v2, 1  ;;  %v1277_v61 = vsel %vm903_vm4, %v1244_v6, %v1276_v50 }
 0x50c   : > { %v1259_v7 = vadd.f32 %v1209_v41, %v1208_v57  ;;  %v1256_v17 = vadd.f32 %v1255_v16, %v1254_v62  ;;  %v1251_v31 = vadd.f32 %v1250_v29, %v1249_v2 }
 0x50e   : > { %v1260_v35 = vrot.slane %v1259_v7, 4  ;;  %v1257_v21 = vrot.slane %v1256_v17, 1  ;;  %v1278_v43 = vsel %vm905_vm5, %v1251_v31, %v1277_v61 }
 0x510   : > { %v1261_v45 = vadd.f32 %v1260_v35, %v1259_v7  ;;  %v1258_v23 = vadd.f32 %v1257_v21, %v1256_v17 }
 0x512   : > { %v1262_v39 = vrot.slane %v1261_v45, 2  ;;  %v1279_v11 = vsel %vm907_vm6, %v1258_v23, %v1278_v43 }
 0x514   : > { %v1263_v18 = vadd.f32 %v1262_v39, %v1261_v45 }
 0x516   : > { %v1264_v28 = vrot.slane %v1263_v18, 1 }
 0x518   : > { %v1265_v59 = vadd.f32 %v1264_v28, %v1263_v18 }
 0x51a   : > { %v1280_v38 = vsel %vm909_vm7, %v1265_v59, %v1279_v11 }
 0x51b   : > { %1282 = vst [vmem:[%s334_s6] sm:$0xff] %v1280_v38 }
 0x51c   : > { %1732 = shalt.err (!%p1729_p10)
}
 0x51d   : > { %1450 = dma.vmem_to_hbm [thread:$0]  (%p1897_p3), %s1297_s19, 128, %s1299_s20, %s1284_s12  }
 0x51e PF: > { %s1310_s14 = sand.u32 1, %s1763_s26   ;;  %p2523_p12 = scmp.ge.s32.totalorder %s1775_s29, 2 }
 0x51f   : > { %s1311_s16 = scalar_lea.sflag [#allocation5], %s1310_s14 }
 0x520   : > { %p1464_p13 = pnand %p2523_p12, %p1860_p6 }
 0x522   : > { %p1465_p0 = pneg %p1464_p13 }
 0x524   : > { %1758 = dma.done.wait (%p1465_p0), %s1311_s16, 128  }
 0x525   : > { %1760 = vsyncadd (%p1465_p0), %s1311_s16, 4294967168  ;;  %p23_p5 = scmp.ge.s32.totalorder %s1887_s23, 4   ;;  %s2524_s26 = smov %s1767_s27 }
 0x526   : > { %s2525_s27 = smov %s1771_s28  ;;  %s2526_s28 = smov %s1903_s10 }
 0x527   : > { %s2527_s29 = smov %s1887_s23  ;;  %25 = sbr.rel (!%p23_p5) target bundleno = 9 (0x9), region = 101 }
 0x52c   :  { %1317 = vsyncpa [#allocation4], 1 }
 0x52d   :  { %1319 = vsyncpa [#allocation4 + $0x1], 1 }
 0x52e   :  { %1320 = vsyncpa [#allocation7], 1 }
 0x52f   :  { %1321 = vsyncpa [#allocation5], 1 }
 0x530   :  { %1323 = vsyncpa [#allocation5 + $0x1], 1 }

</bundles_post_ra>
